<compile_context>
chip_gen: v7x
topology: tpu7x:2x2x1
jax: 0.10.0
libtpu: 0.0.40
codegen_flags: <defaults>
</compile_context>

<pallas_src>
import functools

import jax
import jax.numpy as jnp
from jax import lax
from jax.experimental import pallas as pl
from jax.experimental.pallas import tpu as pltpu


NEG_BIG = -1e30      # additive mask value / max-pool fill (f32; representable in bf16)
MASK_SCALE = 1e30    # scale for the int8 {0,-1} additive mask (v5e path)
D_PAD = 128          # lane-dense padding of the GAT feature dim


# ---------------------------------------------------------------------------
# Static configuration helpers
# ---------------------------------------------------------------------------
def _round_up(x: int, m: int) -> int:
    return ((x + m - 1) // m) * m


def _largest_tile(n_pad: int, cap: int) -> int:
    v = (min(cap, n_pad) // 128) * 128
    while v > 128 and n_pad % v != 0:
        v -= 128
    return max(v, 128)


def _snap_tile(v: int, n_pad: int) -> int:
    v = max(128, (v // 128) * 128)
    while n_pad % v != 0:
        v -= 128
    return v


def _vmem_limit_bytes() -> int:
    """Per-generation scoped-VMEM budget (half of physical, conservative fallback)."""
    try:
        info = pltpu.get_tpu_info()
        cap = int(getattr(info, "vmem_capacity_bytes", 0) or 0)
    except Exception:
        cap = 0
    if cap <= 0:
        cap = 64 * 1024 * 1024          # v7x-sized fallback: safe on every generation
    return int(min(cap // 2, 96 * 1024 * 1024))


def _use_int8_adj() -> bool:
    """v5e is HBM-bound on the N^2 adjacency stream -> int8 halves it."""
    try:
        kind = jax.devices()[0].device_kind.lower()
    except Exception:
        return False
    return ("v5 lite" in kind) or ("v5e" in kind) or ("v5litepod" in kind)


_VMEM_LIMIT = _vmem_limit_bytes()
_ADJ_INT8 = _use_int8_adj()


def _attention_tiles(n_pad: int, adj_bytes: int, vmem_limit: int):
    """Pick (TM, TJ) attention tiles and whether H can stay VMEM-resident."""
    # >= 2 row blocks whenever possible so both v7x TensorCores get work on the parallel axis.
    tm = _largest_tile(n_pad, min(512, n_pad // 2)) if n_pad >= 256 else 128
    tj = _largest_tile(n_pad, 2048)
    h_resident = n_pad * D_PAD * 2 <= 6 * 1024 * 1024     # bf16 H fits comfortably

    def est(tm_, tj_):
        b = tm_ * tj_ * (2 * adj_bytes + 8)                # adj double-buffer + s(f32) + p(bf16)
        b += tm_ * D_PAD * 4 * 3                           # acc scratch + double-buffered out
        b += (2 * n_pad * D_PAD * 2) if h_resident else (2 * tj_ * D_PAD * 2)
        b += 2 * 1024 * 1024                               # e_dst / e_src / bias / internal slack
        return b

    while est(tm, tj) > vmem_limit and (tm > 128 or tj > 128):
        if tj >= tm and tj > 128:
            tj = _snap_tile(tj // 2, n_pad)
        else:
            tm = _snap_tile(tm // 2, n_pad)
    return tm, tj, h_resident


# ---------------------------------------------------------------------------
# Kernels
# ---------------------------------------------------------------------------
def gat_project_kernel(x_ref, w_ref, att_ref, h_ref, e_ref, *, dim):
    """H = X @ W (bf16 MXU, f32 accum), both attention logits in one MXU op, and a ones column
    at lane `dim` so the attention kernel gets the softmax denominator from the MXU for free."""
    x = x_ref[...].astype(jnp.bfloat16)
    w = w_ref[...].astype(jnp.bfloat16)
    h = jnp.dot(x, w, preferred_element_type=jnp.float32)                  # (TM, 128) f32
    # column 0 = <h, a_dst> (target logit), column 1 = <h, a_src> (source logit)
    e_ref[...] = jnp.dot(h, att_ref[...], preferred_element_type=jnp.float32)
    lane = lax.broadcasted_iota(jnp.int32, h.shape, 1)
    h_ref[...] = jnp.where(lane == dim, 1.0, h).astype(jnp.bfloat16)


def gat_attention_kernel(jt_ref, cnt_ref, e_dst_ref, e_src_ref, h_ref, bias_ref, adj_ref,
                         out_ref, m_ref, acc_ref, *, dim, tj, nb_j, h_resident, adj_int8):
    """Flash-style masked softmax aggregation.  Grid = (row blocks 'parallel',
    non-empty neighbour blocks 'arbitrary', table-driven via scalar prefetch)."""
    i = pl.program_id(0)
    k = pl.program_id(1)
    cnt = cnt_ref[i]                         # number of non-empty neighbour blocks for row block i

    @pl.when(k == 0)
    def _init():
        m_ref[...] = jnp.full_like(m_ref, NEG_BIG)
        acc_ref[...] = jnp.zeros_like(acc_ref)

    @pl.when(k < cnt)
    def _step():
        # scores[i, jj] = LeakyReLU(e_dst[i] + e_src[jj], 0.2) for edge jj -> i, then additive mask
        s = e_dst_ref[...] + e_src_ref[...]              # (TM,1)+(1,TJ) -> (TM,TJ) f32
        s = jnp.maximum(s, 0.2 * s)                      # LeakyReLU without a select
        if adj_int8:
            s = s + adj_ref[...].astype(jnp.float32) * MASK_SCALE   # adj in {0,-1}
        else:
            s = s + adj_ref[...].astype(jnp.float32)                # adj in {0, -1e30} bf16

        m_prev = m_ref[...]
        m_new = jnp.maximum(m_prev, jnp.max(s, axis=-1, keepdims=True))
        corr = jnp.exp(m_prev - m_new)                   # (TM,1) f32
        p = jnp.exp((s - m_new).astype(jnp.bfloat16))    # bf16 EUP path; masked entries -> 0

        if h_resident:
            jblk = jt_ref[i * nb_j + k]
            row0 = pl.multiple_of(jblk * tj, tj)
            hj = h_ref[pl.ds(row0, tj), :]
        else:
            hj = h_ref[...]
        # hj carries a ones column at lane `dim`, so this matmul also accumulates the denominator.
        acc_ref[...] = corr * acc_ref[...] + jnp.dot(p, hj, preferred_element_type=jnp.float32)
        m_ref[...] = m_new

    @pl.when(k == cnt - 1)
    def _finalize():
        acc = acc_ref[...]
        inv = pl.reciprocal(acc[:, dim:dim + 1], approx=True)     # EUP, off the VPU
        out = acc * inv
        lane = lax.broadcasted_iota(jnp.int32, out.shape, 1)
        out = jnp.where(lane == dim, 0.0, out) + bias_ref[...]    # zero the ones-column, add bias
        out_ref[...] = jnp.maximum(out, 0.0)                      # Encoder's F.relu


def mean_pool_kernel(m_ref, x_ref, o_ref):
    """pooled += mean_mat_block @ slab_block, accumulated over node blocks."""
    @pl.when(pl.program_id(0) == 0)
    def _init():
        o_ref[...] = jnp.zeros_like(o_ref)
    o_ref[...] += jnp.dot(m_ref[...], x_ref[...], preferred_element_type=jnp.float32)


def max_pool_kernel(mem_ref, x_ref, o_ref):
    """Vectorized masked max over node blocks (pool tile capped, G padded to 8 sublanes)."""
    @pl.when(pl.program_id(0) == 0)
    def _init():
        o_ref[...] = jnp.full_like(o_ref, NEG_BIG)
    mem = mem_ref[...]                                            # (G_pad, TK)
    x = x_ref[...]                                                # (TK, LD)
    masked = jnp.where(mem[:, :, None] > 0, x[None, :, :], NEG_BIG)
    o_ref[...] = jnp.maximum(o_ref[...], jnp.max(masked, axis=1))


# ---------------------------------------------------------------------------
# pallas_call wrappers
# ---------------------------------------------------------------------------
def gat_project(x, w_pad, att_pad, *, dim, tm, vmem_limit):
    n_pad, f = x.shape
    d_pad = w_pad.shape[1]
    return pl.pallas_call(
        functools.partial(gat_project_kernel, dim=dim),
        out_shape=(jax.ShapeDtypeStruct((n_pad, d_pad), jnp.bfloat16),
                   jax.ShapeDtypeStruct((n_pad, 2), jnp.float32)),
        grid_spec=pltpu.PrefetchScalarGridSpec(
            num_scalar_prefetch=0,
            grid=(n_pad // tm,),
            in_specs=[pl.BlockSpec((tm, f), lambda i: (i, 0)),
                      pl.BlockSpec((f, d_pad), lambda i: (0, 0)),
                      pl.BlockSpec((d_pad, 2), lambda i: (0, 0))],
            out_specs=(pl.BlockSpec((tm, d_pad), lambda i: (i, 0)),
                       pl.BlockSpec((tm, 2), lambda i: (i, 0))),
        ),
        compiler_params=pltpu.CompilerParams(
            dimension_semantics=("parallel",), vmem_limit_bytes=vmem_limit),
    )(x, w_pad, att_pad)


def gat_attention(jt, cnt, e_dst, e_src_row, h_bf16, adj, bias_pad, *, dim, tm, tj, nb_j,
                  h_resident, adj_int8, vmem_limit):
    n_pad, d_pad = h_bf16.shape
    kernel = functools.partial(gat_attention_kernel, dim=dim, tj=tj, nb_j=nb_j,
                               h_resident=h_resident, adj_int8=adj_int8)
    if h_resident:
        h_spec = pl.BlockSpec((n_pad, d_pad), lambda i, k, jt_r, cnt_r: (0, 0))
    else:
        h_spec = pl.BlockSpec((tj, d_pad),
                              lambda i, k, jt_r, cnt_r: (jt_r[i * nb_j + k], 0))
    return pl.pallas_call(
        kernel,
        out_shape=jax.ShapeDtypeStruct((n_pad, d_pad), jnp.float32),
        grid_spec=pltpu.PrefetchScalarGridSpec(
            num_scalar_prefetch=2,                       # jt (block table), cnt (per-row-block count)
            grid=(n_pad // tm, nb_j),                    # softmax reduction axis last
            in_specs=[
                pl.BlockSpec((tm, 1), lambda i, k, jt_r, cnt_r: (i, 0)),      # e_dst column
                pl.BlockSpec((1, tj),
                             lambda i, k, jt_r, cnt_r: (0, jt_r[i * nb_j + k])),  # e_src row
                h_spec,                                                        # values H (+ ones col)
                pl.BlockSpec((1, d_pad), lambda i, k, jt_r, cnt_r: (0, 0)),    # bias
                pl.BlockSpec((tm, tj),
                             lambda i, k, jt_r, cnt_r: (i, jt_r[i * nb_j + k])),  # adjacency mask
            ],
            out_specs=pl.BlockSpec((tm, d_pad), lambda i, k, jt_r, cnt_r: (i, 0)),
            scratch_shapes=[pltpu.VMEM((tm, 1), jnp.float32),      # running max
                            pltpu.VMEM((tm, d_pad), jnp.float32)],  # accumulator (+ denom column)
        ),
        compiler_params=pltpu.CompilerParams(
            dimension_semantics=("parallel", "arbitrary"),
            vmem_limit_bytes=vmem_limit),
    )(jt, cnt, e_dst, e_src_row, h_bf16, bias_pad, adj)


def pool_slab(slab, pool_mat, tk, *, kind):
    g_pad, n_pad = pool_mat.shape
    ld = slab.shape[1]
    kernel = max_pool_kernel if kind == "max" else mean_pool_kernel
    return pl.pallas_call(
        kernel,
        out_shape=jax.ShapeDtypeStruct((g_pad, ld), jnp.float32),
        grid_spec=pltpu.PrefetchScalarGridSpec(
            num_scalar_prefetch=0,
            grid=(n_pad // tk,),
            in_specs=[pl.BlockSpec((g_pad, tk), lambda k: (0, k)),
                      pl.BlockSpec((tk, ld), lambda k: (k, 0))],
            out_specs=pl.BlockSpec((g_pad, ld), lambda k: (0, 0)),
        ),
        compiler_params=pltpu.CompilerParams(dimension_semantics=("arbitrary",)),
    )(pool_mat, slab)


# ---------------------------------------------------------------------------
# Graph preprocessing (plain JAX; O(N^2) scatter once, O(E) block table)
# ---------------------------------------------------------------------------
def build_adj_mask(edge_index, n_pad, use_int8):
    """Additive mask built directly in its final dtype. adj[i, j] 'open' iff edge j -> i exists
    (PyG: row0=src, row1=dst) plus self loops on EVERY row (incl. padding -> no fully-masked rows)."""
    src, dst = edge_index[0], edge_index[1]
    diag = jnp.arange(n_pad)
    if use_int8:
        adj = jnp.full((n_pad, n_pad), -1, jnp.int8)       # -1 = masked, 0 = edge
        adj = adj.at[dst, src].set(0)
        adj = adj.at[diag, diag].set(0)
    else:
        adj = jnp.full((n_pad, n_pad), NEG_BIG, jnp.bfloat16)   # -1e30 = masked, 0 = edge
        adj = adj.at[dst, src].set(0)
        adj = adj.at[diag, diag].set(0)
    return adj


def build_block_table(edge_index, n_pad, tm, tj):
    """Per row-block list of non-empty neighbour blocks (padded with the last valid one) + counts."""
    nb_i, nb_j = n_pad // tm, n_pad // tj
    src = edge_index[0].astype(jnp.int32)
    dst = edge_index[1].astype(jnp.int32)
    nz = jnp.zeros((nb_i, nb_j), jnp.bool_)
    nz = nz.at[dst // tm, src // tj].set(True)
    diag = jnp.arange(n_pad, dtype=jnp.int32)
    nz = nz.at[diag // tm, diag // tj].set(True)           # self loops -> counts >= 1 everywhere
    counts = jnp.sum(nz.astype(jnp.int32), axis=1)
    order = jnp.argsort(jnp.logical_not(nz).astype(jnp.int32), axis=1).astype(jnp.int32)
    k_idx = jnp.arange(nb_j, dtype=jnp.int32)[None, :]
    last_blk = jnp.take_along_axis(order, jnp.clip(counts - 1, 0, nb_j - 1)[:, None], axis=1)
    jt = jnp.where(k_idx < counts[:, None], order, last_blk)
    return jt.reshape(-1).astype(jnp.int32), counts.astype(jnp.int32)


def build_pool_mats(batch, num_graphs, n_pad, g_pad):
    n = batch.shape[0]
    batch_pad = jnp.full((n_pad,), -1, jnp.int32).at[:n].set(batch)
    member = (batch_pad[None, :] == jnp.arange(g_pad, dtype=jnp.int32)[:, None]).astype(jnp.float32)
    counts = jnp.sum(member, axis=1, keepdims=True)
    mean_mat = member / jnp.maximum(counts, 1.0)
    return mean_mat, member                                # (G_pad, Np) each


# ---------------------------------------------------------------------------
# Encoder_GAT forward (glue in plain JAX; hot loops in Pallas)
# ---------------------------------------------------------------------------
def init_params(key, num_features, dim, num_gc_layers):
    params = []
    for i in range(num_gc_layers):
        in_dim = num_features if i == 0 else dim
        key, k_w, k_as, k_ad = jax.random.split(key, 4)
        scale = 1.0 / jnp.sqrt(jnp.float32(in_dim))
        params.append(dict(
            w=jax.random.normal(k_w, (in_dim, dim), jnp.float32) * scale,
            a_src=jax.random.normal(k_as, (1, dim), jnp.float32) * 0.1,
            a_dst=jax.random.normal(k_ad, (1, dim), jnp.float32) * 0.1,
            bias=jnp.zeros((1, dim), jnp.float32),
        ))
    return params


@functools.partial(jax.jit, static_argnames=("num_gc_layers", "pool_type", "num_graphs"))
def encoder_gat_forward(x, edge_index, batch, params, *, num_gc_layers, pool_type, num_graphs):
    n, _ = x.shape
    dim = params[0]["w"].shape[1]
    n_pad = _round_up(max(n, 128), 128)

    adj_int8 = _ADJ_INT8
    adj_bytes = 1 if adj_int8 else 2
    vmem_limit = _VMEM_LIMIT
    tm, tj, h_resident = _attention_tiles(n_pad, adj_bytes, vmem_limit)
    nb_j = n_pad // tj
    g_pad = _round_up(num_graphs, 8)
    tk = 256 if n_pad % 256 == 0 else 128

    adj = build_adj_mask(edge_index, n_pad, adj_int8)
    jt, cnt = build_block_table(edge_index, n_pad, tm, tj)
    mean_mat, member = build_pool_mats(batch, num_graphs, n_pad, g_pad)

    h_in = jnp.pad(x.astype(jnp.float32), ((0, n_pad - n), (0, 0)))
    outs = []
    for i in range(num_gc_layers):
        p = params[i]
        in_dim = p["w"].shape[0]
        in_cols = h_in.shape[1]
        w_pad = jnp.zeros((in_cols, D_PAD), jnp.float32).at[:in_dim, :dim].set(p["w"])
        att_pad = (jnp.zeros((D_PAD, 2), jnp.float32)
                   .at[:dim, 0].set(p["a_dst"][0])
                   .at[:dim, 1].set(p["a_src"][0]))
        bias_pad = jnp.zeros((1, D_PAD), jnp.float32).at[:, :dim].set(p["bias"])

        h_bf16, e = gat_project(h_in, w_pad, att_pad, dim=dim, tm=tm, vmem_limit=vmem_limit)
        e_dst = e[:, 0:1]                                          # (Np, 1)
        e_src_row = e[:, 1].reshape(1, n_pad)                      # transpose hoisted to wrapper
        h_out = gat_attention(jt, cnt, e_dst, e_src_row, h_bf16, adj, bias_pad,
                              dim=dim, tm=tm, tj=tj, nb_j=nb_j,
                              h_resident=h_resident, adj_int8=adj_int8,
                              vmem_limit=vmem_limit)
        outs.append(h_out[:, :dim])                                # drop lane padding for the slab
        h_in = h_out                                               # next layer eats the 128-wide slab

    slab = jnp.concatenate(outs, axis=1)                           # (Np, L*dim)
    if pool_type == "global_max_pool":
        pooled = pool_slab(slab, member, tk, kind="max")
    else:
        pooled = pool_slab(slab, mean_mat, tk, kind="mean")
    return pooled[:num_graphs], slab[:n]


# ---------------------------------------------------------------------------
# Pure-JAX reference (same bf16 casting points) for correctness checking
# ---------------------------------------------------------------------------
def reference_forward(x, edge_index, batch, params, *, num_gc_layers, pool_type, num_graphs):
    n = x.shape[0]
    src, dst = edge_index[0], edge_index[1]
    adj = jnp.zeros((n, n), jnp.float32).at[dst, src].set(1.0)
    idx = jnp.arange(n)
    adj = adj.at[idx, idx].set(1.0)
    mask = adj > 0

    h = x
    xs = []
    for i in range(num_gc_layers):
        p = params[i]
        hp = jnp.dot(h.astype(jnp.bfloat16), p["w"].astype(jnp.bfloat16),
                     preferred_element_type=jnp.float32)
        e_dst = hp @ p["a_dst"].T
        e_src = hp @ p["a_src"].T
        s = e_dst + e_src.T
        s = jnp.where(s > 0, s, 0.2 * s)
        s = jnp.where(mask, s, NEG_BIG)
        m = jnp.max(s, axis=-1, keepdims=True)
        pm = jnp.exp((s - m).astype(jnp.bfloat16)).astype(jnp.float32)
        alpha = pm / jnp.sum(pm, axis=-1, keepdims=True)
        out = jnp.dot(alpha.astype(jnp.bfloat16), hp.astype(jnp.bfloat16),
                      preferred_element_type=jnp.float32) + p["bias"]
        h = jnp.maximum(out, 0.0)
        xs.append(h)

    member = (batch[None, :] == jnp.arange(num_graphs)[:, None]).astype(jnp.float32)
    if pool_type == "global_max_pool":
        xpool = [jnp.max(jnp.where(member[:, :, None] > 0, xi[None], NEG_BIG), axis=1)
                 for xi in xs]
    else:
        counts = jnp.maximum(member.sum(axis=1, keepdims=True), 1.0)
        xpool = [(member @ xi) / counts for xi in xs]
    return jnp.concatenate(xpool, axis=1), jnp.concatenate(xs, axis=1)


# ---------------------------------------------------------------------------
if __name__ == "__main__":
    num_features = 8
    dim = 32
    num_gc_layers = 3

    num_graphs = 2
    nodes_per_graph = 8
    n = num_graphs * nodes_per_graph

    key = jax.random.PRNGKey(0)
    key, k_x = jax.random.split(key)
    x = jax.random.normal(k_x, (n, num_features), jnp.float32)

    # deterministic edge_index: bidirectional ring within each graph
    srcs, dsts = [], []
    for g in range(num_graphs):
        off = g * nodes_per_graph
        for i in range(nodes_per_graph):
            j = (i + 1) % nodes_per_graph
            srcs += [off + i, off + j]
            dsts += [off + j, off + i]
    edge_index = jnp.array([srcs, dsts], dtype=jnp.int32)     # (2, E)
    batch = jnp.repeat(jnp.arange(num_graphs, dtype=jnp.int32), nodes_per_graph)

    params = init_params(jax.random.PRNGKey(42), num_features, dim, num_gc_layers)

    x_mean, xs_cat = encoder_gat_forward(
        x, edge_index, batch, params,
        num_gc_layers=num_gc_layers, pool_type="global_mean_pool", num_graphs=num_graphs)
    x_max, _ = encoder_gat_forward(
        x, edge_index, batch, params,
        num_gc_layers=num_gc_layers, pool_type="global_max_pool", num_graphs=num_graphs)
    jax.block_until_ready((x_mean, x_max, xs_cat))

    assert x_mean.shape == (num_graphs, dim * num_gc_layers)
    assert x_max.shape == (num_graphs, dim * num_gc_layers)
    assert xs_cat.shape == (n, dim * num_gc_layers)
    assert bool(jnp.all(jnp.isfinite(x_mean)))
    assert bool(jnp.all(jnp.isfinite(x_max)))

    ref_mean, ref_xs = reference_forward(
        x, edge_index, batch, params,
        num_gc_layers=num_gc_layers, pool_type="global_mean_pool", num_graphs=num_graphs)
    ref_max, _ = reference_forward(
        x, edge_index, batch, params,
        num_gc_layers=num_gc_layers, pool_type="global_max_pool", num_graphs=num_graphs)
    assert bool(jnp.allclose(xs_cat, ref_xs, rtol=5e-2, atol=5e-2))
    assert bool(jnp.allclose(x_mean, ref_mean, rtol=5e-2, atol=5e-2))
    assert bool(jnp.allclose(x_max, ref_max, rtol=5e-2, atol=5e-2))

    print("KERNEL_OK")
</pallas_src>

<mosaic_0001>
module attributes {stable_mosaic.version = 11 : i64} {
  func.func @gat_project_kernel(%arg0: i32, %arg1: memref<128x8xf32, #tpu.memory_space<vmem>>, %arg2: memref<8x128xf32, #tpu.memory_space<vmem>>, %arg3: memref<128x2xf32, #tpu.memory_space<vmem>>, %arg4: memref<128x128xbf16, #tpu.memory_space<vmem>>, %arg5: memref<128x2xf32, #tpu.memory_space<vmem>>) attributes {dimension_semantics = [#tpu.dimension_semantics<parallel>], iteration_bounds = array<i64: 1>, scalar_prefetch = 0 : i64, scratch_operands = 0 : i64, tpu.core_type = #tpu.core_type<tc>, window_params = [{transform_indices = @transform_0, window_bounds = array<i64: 128, 8>}, {pipeline_mode = #tpu.pipeline_mode<synchronous>, transform_indices = @transform_1, window_bounds = array<i64: 8, 128>}, {pipeline_mode = #tpu.pipeline_mode<synchronous>, transform_indices = @transform_2, window_bounds = array<i64: 128, 2>}, {transform_indices = @transform_3, window_bounds = array<i64: 128, 128>}, {transform_indices = @transform_4, window_bounds = array<i64: 128, 2>}]} {
    %c0 = arith.constant 0 : index
    %c0_0 = arith.constant 0 : index
    %0 = vector.load %arg1[%c0, %c0_0] : memref<128x8xf32, #tpu.memory_space<vmem>>, vector<128x8xf32>
    %1 = arith.truncf %0 : vector<128x8xf32> to vector<128x8xbf16>
    %c0_1 = arith.constant 0 : index
    %c0_2 = arith.constant 0 : index
    %2 = vector.load %arg2[%c0_1, %c0_2] : memref<8x128xf32, #tpu.memory_space<vmem>>, vector<8x128xf32>
    %3 = arith.truncf %2 : vector<8x128xf32> to vector<8x128xbf16>
    %cst = arith.constant dense<0.000000e+00> : vector<128x128xf32>
    %4 = tpu.matmul %1, %3, %cst {dimension_numbers = #tpu.dot_dimension_numbers<[1], [0], [0], [1], [0, 0, 1, 1], [], []>} : vector<128x8xbf16>, vector<8x128xbf16>, vector<128x128xf32> -> vector<128x128xf32>
    %c0_3 = arith.constant 0 : index
    %c0_4 = arith.constant 0 : index
    %5 = vector.load %arg3[%c0_3, %c0_4] : memref<128x2xf32, #tpu.memory_space<vmem>>, vector<128x2xf32>
    %cst_5 = arith.constant dense<0.000000e+00> : vector<128x2xf32>
    %6 = tpu.matmul %4, %5, %cst_5 {dimension_numbers = #tpu.dot_dimension_numbers<[1], [0], [0], [1], [0, 0, 1, 1], [], []>} : vector<128x128xf32>, vector<128x2xf32>, vector<128x2xf32> -> vector<128x2xf32>
    %c0_6 = arith.constant 0 : index
    %c0_7 = arith.constant 0 : index
    %7 = vector.load %arg5[%c0_6, %c0_7] : memref<128x2xf32, #tpu.memory_space<vmem>>, vector<128x2xf32>
    tpu.vector_store %arg5[%c0_6, %c0_7], %6 {strides = array<i32>} : memref<128x2xf32, #tpu.memory_space<vmem>>, vector<128x2xf32>,
    %8 = tpu.iota {dimensions = array<i32: 1>} : vector<128x128xi32>
    %c32_i32 = arith.constant 32 : i32
    %9 = vector.broadcast %c32_i32 : i32 to vector<128x128xi32>
    %10 = arith.cmpi eq, %8, %9 : vector<128x128xi32>
    %cst_8 = arith.constant 1.000000e+00 : f32
    %11 = vector.broadcast %cst_8 : f32 to vector<128x128xf32>
    %12 = arith.select %10, %11, %4 : vector<128x128xi1>, vector<128x128xf32>
    %13 = arith.truncf %12 : vector<128x128xf32> to vector<128x128xbf16>
    %c0_9 = arith.constant 0 : index
    %c0_10 = arith.constant 0 : index
    %14 = vector.load %arg4[%c0_9, %c0_10] : memref<128x128xbf16, #tpu.memory_space<vmem>>, vector<128x128xbf16>
    tpu.vector_store %arg4[%c0_9, %c0_10], %13 {strides = array<i32>} : memref<128x128xbf16, #tpu.memory_space<vmem>>, vector<128x128xbf16>,
    return
  }
  func.func @transform_0(%arg0: i32) -> (i32, i32) {
    %c0_i32 = arith.constant 0 : i32
    %c0_i32_0 = arith.constant 0 : i32
    return %arg0, %c0_i32 : i32, i32
  }
  func.func @transform_1(%arg0: i32) -> (i32, i32) {
    %c0_i32 = arith.constant 0 : i32
    %c0_i32_0 = arith.constant 0 : i32
    %c0_i32_1 = arith.constant 0 : i32
    return %c0_i32, %c0_i32_0 : i32, i32
  }
  func.func @transform_2(%arg0: i32) -> (i32, i32) {
    %c0_i32 = arith.constant 0 : i32
    %c0_i32_0 = arith.constant 0 : i32
    %c0_i32_1 = arith.constant 0 : i32
    return %c0_i32, %c0_i32_0 : i32, i32
  }
  func.func @transform_3(%arg0: i32) -> (i32, i32) {
    %c0_i32 = arith.constant 0 : i32
    %c0_i32_0 = arith.constant 0 : i32
    return %arg0, %c0_i32 : i32, i32
  }
  func.func @transform_4(%arg0: i32) -> (i32, i32) {
    %c0_i32 = arith.constant 0 : i32
    %c0_i32_0 = arith.constant 0 : i32
    return %arg0, %c0_i32 : i32, i32
  }
}

module attributes {stable_mosaic.version = 11 : i64} {
  func.func @gat_attention_kernel(%arg0: i32, %arg1: i32, %arg2: memref<1xi32, #tpu.memory_space<smem>>, %arg3: memref<1xi32, #tpu.memory_space<smem>>, %arg4: memref<128x1xf32, #tpu.memory_space<vmem>>, %arg5: memref<1x128xf32, #tpu.memory_space<vmem>>, %arg6: memref<128x128xbf16, #tpu.memory_space<vmem>>, %arg7: memref<1x128xf32, #tpu.memory_space<vmem>>, %arg8: memref<128x128xbf16, #tpu.memory_space<vmem>>, %arg9: memref<128x128xf32, #tpu.memory_space<vmem>>, %arg10: memref<128x1xf32, #tpu.memory_space<vmem>>, %arg11: memref<128x128xf32, #tpu.memory_space<vmem>>) attributes {dimension_semantics = [#tpu.dimension_semantics<parallel>, #tpu.dimension_semantics<arbitrary>], iteration_bounds = array<i64: 1, 1>, scalar_prefetch = 2 : i64, scratch_operands = 2 : i64, tpu.core_type = #tpu.core_type<tc>, window_params = [{transform_indices = @transform_0, window_bounds = array<i64: 128, 1>}, {transform_indices = @transform_1, window_bounds = array<i64: 1, 128>}, {pipeline_mode = #tpu.pipeline_mode<synchronous>, transform_indices = @transform_2, window_bounds = array<i64: 128, 128>}, {pipeline_mode = #tpu.pipeline_mode<synchronous>, transform_indices = @transform_3, window_bounds = array<i64: 1, 128>}, {transform_indices = @transform_4, window_bounds = array<i64: 128, 128>}, {transform_indices = @transform_5, window_bounds = array<i64: 128, 128>}]} {
    %0 = arith.index_cast %arg0 : i32 to index
    %1 = memref.load %arg3[%0] : memref<1xi32, #tpu.memory_space<smem>>
    %c0_i32 = arith.constant 0 : i32
    %2 = arith.cmpi eq, %arg1, %c0_i32 : i32
    %3 = arith.extui %2 : i1 to i32
    %c0_i32_0 = arith.constant 0 : i32
    %4 = arith.cmpi ne, %3, %c0_i32_0 : i32
    scf.if %4 {
      %cst = arith.constant -1.000000e+30 : f32
      %12 = vector.broadcast %cst : f32 to vector<128x1xf32>
      %c0 = arith.constant 0 : index
      %c0_3 = arith.constant 0 : index
      %13 = vector.load %arg10[%c0, %c0_3] : memref<128x1xf32, #tpu.memory_space<vmem>>, vector<128x1xf32>
      tpu.vector_store %arg10[%c0, %c0_3], %12 {strides = array<i32>} : memref<128x1xf32, #tpu.memory_space<vmem>>, vector<128x1xf32>,
      %cst_4 = arith.constant 0.000000e+00 : f32
      %14 = vector.broadcast %cst_4 : f32 to vector<128x128xf32>
      %c0_5 = arith.constant 0 : index
      %c0_6 = arith.constant 0 : index
      %15 = vector.load %arg11[%c0_5, %c0_6] : memref<128x128xf32, #tpu.memory_space<vmem>>, vector<128x128xf32>
      tpu.vector_store %arg11[%c0_5, %c0_6], %14 {strides = array<i32>} : memref<128x128xf32, #tpu.memory_space<vmem>>, vector<128x128xf32>,
    } else {
    }
    %5 = arith.cmpi slt, %arg1, %1 : i32
    %6 = arith.extui %5 : i1 to i32
    %c0_i32_1 = arith.constant 0 : i32
    %7 = arith.cmpi ne, %6, %c0_i32_1 : i32
    scf.if %7 {
      %c0 = arith.constant 0 : index
      %c0_3 = arith.constant 0 : index
      %12 = vector.load %arg4[%c0, %c0_3] : memref<128x1xf32, #tpu.memory_space<vmem>>, vector<128x1xf32>
      %c0_4 = arith.constant 0 : index
      %c0_5 = arith.constant 0 : index
      %13 = vector.load %arg5[%c0_4, %c0_5] : memref<1x128xf32, #tpu.memory_space<vmem>>, vector<1x128xf32>
      %14 = vector.broadcast %12 : vector<128x1xf32> to vector<128x128xf32>
      %15 = vector.broadcast %13 : vector<1x128xf32> to vector<128x128xf32>
      %16 = arith.addf %14, %15 : vector<128x128xf32>
      %cst = arith.constant 2.000000e-01 : f32
      %17 = vector.broadcast %cst : f32 to vector<128x128xf32>
      %18 = arith.mulf %17, %16 : vector<128x128xf32>
      %19 = arith.maximumf %16, %18 : vector<128x128xf32>
      %c0_6 = arith.constant 0 : index
      %c0_7 = arith.constant 0 : index
      %20 = vector.load %arg8[%c0_6, %c0_7] : memref<128x128xbf16, #tpu.memory_space<vmem>>, vector<128x128xbf16>
      %21 = arith.extf %20 : vector<128x128xbf16> to vector<128x128xf32>
      %22 = arith.addf %19, %21 : vector<128x128xf32>
      %c0_8 = arith.constant 0 : index
      %c0_9 = arith.constant 0 : index
      %23 = vector.load %arg10[%c0_8, %c0_9] : memref<128x1xf32, #tpu.memory_space<vmem>>, vector<128x1xf32>
      %cst_10 = arith.constant dense<0xFF800000> : vector<128xf32>
      %24 = vector.multi_reduction <maximumf>, %22, %cst_10 [1] : vector<128x128xf32> to vector<128xf32>
      %25 = vector.shape_cast %24 : vector<128xf32> to vector<128x1xf32>
      %26 = arith.maximumf %23, %25 : vector<128x1xf32>
      %27 = arith.subf %23, %26 : vector<128x1xf32>
      %28 = math.exp %27 : vector<128x1xf32>
      %29 = vector.broadcast %26 : vector<128x1xf32> to vector<128x128xf32>
      %30 = arith.subf %22, %29 : vector<128x128xf32>
      %31 = arith.truncf %30 : vector<128x128xf32> to vector<128x128xbf16>
      %32 = math.exp %31 : vector<128x128xbf16>
      %c1_i32_11 = arith.constant 1 : i32
      %33 = arith.muli %arg0, %c1_i32_11 : i32
      %34 = arith.addi %33, %arg1 : i32
      %35 = arith.index_cast %34 : i32 to index
      %36 = memref.load %arg2[%35] : memref<1xi32, #tpu.memory_space<smem>>
      %c128_i32 = arith.constant 128 : i32
      %37 = arith.muli %36, %c128_i32 : i32
      %38 = tpu.assume_multiple %37, 128 : i32
      %39 = arith.index_cast %38 : i32 to index
      %c0_12 = arith.constant 0 : index
      %40 = vector.load %arg6[%39, %c0_12] : memref<128x128xbf16, #tpu.memory_space<vmem>>, vector<128x128xbf16>
      %c0_13 = arith.constant 0 : index
      %c0_14 = arith.constant 0 : index
      %41 = vector.load %arg11[%c0_13, %c0_14] : memref<128x128xf32, #tpu.memory_space<vmem>>, vector<128x128xf32>
      %42 = vector.broadcast %28 : vector<128x1xf32> to vector<128x128xf32>
      %43 = arith.mulf %42, %41 : vector<128x128xf32>
      %cst_15 = arith.constant dense<0.000000e+00> : vector<128x128xf32>
      %44 = tpu.matmul %32, %40, %cst_15 {dimension_numbers = #tpu.dot_dimension_numbers<[1], [0], [0], [1], [0, 0, 1, 1], [], []>} : vector<128x128xbf16>, vector<128x128xbf16>, vector<128x128xf32> -> vector<128x128xf32>
      %45 = arith.addf %43, %44 : vector<128x128xf32>
      %c0_16 = arith.constant 0 : index
      %c0_17 = arith.constant 0 : index
      %46 = vector.load %arg11[%c0_16, %c0_17] : memref<128x128xf32, #tpu.memory_space<vmem>>, vector<128x128xf32>
      tpu.vector_store %arg11[%c0_16, %c0_17], %45 {strides = array<i32>} : memref<128x128xf32, #tpu.memory_space<vmem>>, vector<128x128xf32>,
      %c0_18 = arith.constant 0 : index
      %c0_19 = arith.constant 0 : index
      %47 = vector.load %arg10[%c0_18, %c0_19] : memref<128x1xf32, #tpu.memory_space<vmem>>, vector<128x1xf32>
      tpu.vector_store %arg10[%c0_18, %c0_19], %26 {strides = array<i32>} : memref<128x1xf32, #tpu.memory_space<vmem>>, vector<128x1xf32>,
    } else {
    }
    %c1_i32 = arith.constant 1 : i32
    %8 = arith.subi %1, %c1_i32 : i32
    %9 = arith.cmpi eq, %arg1, %8 : i32
    %10 = arith.extui %9 : i1 to i32
    %c0_i32_2 = arith.constant 0 : i32
    %11 = arith.cmpi ne, %10, %c0_i32_2 : i32
    scf.if %11 {
      %c0 = arith.constant 0 : index
      %c0_3 = arith.constant 0 : index
      %12 = vector.load %arg11[%c0, %c0_3] : memref<128x128xf32, #tpu.memory_space<vmem>>, vector<128x128xf32>
      %13 = vector.extract_strided_slice %12 {offsets = [0, 32], sizes = [128, 1], strides = [1, 1]} : vector<128x128xf32> to vector<128x1xf32>
      %14 = tpu.reciprocal %13 {approx = true} : vector<128x1xf32> -> vector<128x1xf32>
      %15 = vector.broadcast %14 : vector<128x1xf32> to vector<128x128xf32>
      %16 = arith.mulf %12, %15 : vector<128x128xf32>
      %17 = tpu.iota {dimensions = array<i32: 1>} : vector<128x128xi32>
      %c32_i32 = arith.constant 32 : i32
      %18 = vector.broadcast %c32_i32 : i32 to vector<128x128xi32>
      %19 = arith.cmpi eq, %17, %18 : vector<128x128xi32>
      %cst = arith.constant 0.000000e+00 : f32
      %20 = vector.broadcast %cst : f32 to vector<128x128xf32>
      %21 = arith.select %19, %20, %16 : vector<128x128xi1>, vector<128x128xf32>
      %c0_4 = arith.constant 0 : index
      %c0_5 = arith.constant 0 : index
      %22 = vector.load %arg7[%c0_4, %c0_5] : memref<1x128xf32, #tpu.memory_space<vmem>>, vector<1x128xf32>
      %23 = vector.broadcast %22 : vector<1x128xf32> to vector<128x128xf32>
      %24 = arith.addf %21, %23 : vector<128x128xf32>
      %cst_6 = arith.constant 0.000000e+00 : f32
      %25 = vector.broadcast %cst_6 : f32 to vector<128x128xf32>
      %26 = arith.maximumf %24, %25 : vector<128x128xf32>
      %c0_7 = arith.constant 0 : index
      %c0_8 = arith.constant 0 : index
      %27 = vector.load %arg9[%c0_7, %c0_8] : memref<128x128xf32, #tpu.memory_space<vmem>>, vector<128x128xf32>
      tpu.vector_store %arg9[%c0_7, %c0_8], %26 {strides = array<i32>} : memref<128x128xf32, #tpu.memory_space<vmem>>, vector<128x128xf32>,
    } else {
    }
    return
  }
  func.func @transform_0(%arg0: i32, %arg1: i32, %arg2: memref<1xi32, #tpu.memory_space<smem>>, %arg3: memref<1xi32, #tpu.memory_space<smem>>) -> (i32, i32) {
    %c0_i32 = arith.constant 0 : i32
    %c0_i32_0 = arith.constant 0 : i32
    return %arg0, %c0_i32 : i32, i32
  }
  func.func @transform_1(%arg0: i32, %arg1: i32, %arg2: memref<1xi32, #tpu.memory_space<smem>>, %arg3: memref<1xi32, #tpu.memory_space<smem>>) -> (i32, i32) {
    %c1_i32 = arith.constant 1 : i32
    %0 = arith.muli %arg0, %c1_i32 : i32
    %1 = arith.addi %0, %arg1 : i32
    %2 = arith.index_cast %1 : i32 to index
    %3 = memref.load %arg2[%2] : memref<1xi32, #tpu.memory_space<smem>>
    %c0_i32 = arith.constant 0 : i32
    %c0_i32_0 = arith.constant 0 : i32
    return %c0_i32, %3 : i32, i32
  }
  func.func @transform_2(%arg0: i32, %arg1: i32, %arg2: memref<1xi32, #tpu.memory_space<smem>>, %arg3: memref<1xi32, #tpu.memory_space<smem>>) -> (i32, i32) {
    %c0_i32 = arith.constant 0 : i32
    %c0_i32_0 = arith.constant 0 : i32
    %c0_i32_1 = arith.constant 0 : i32
    return %c0_i32, %c0_i32_0 : i32, i32
  }
  func.func @transform_3(%arg0: i32, %arg1: i32, %arg2: memref<1xi32, #tpu.memory_space<smem>>, %arg3: memref<1xi32, #tpu.memory_space<smem>>) -> (i32, i32) {
    %c0_i32 = arith.constant 0 : i32
    %c0_i32_0 = arith.constant 0 : i32
    %c0_i32_1 = arith.constant 0 : i32
    return %c0_i32, %c0_i32_0 : i32, i32
  }
  func.func @transform_4(%arg0: i32, %arg1: i32, %arg2: memref<1xi32, #tpu.memory_space<smem>>, %arg3: memref<1xi32, #tpu.memory_space<smem>>) -> (i32, i32) {
    %c1_i32 = arith.constant 1 : i32
    %0 = arith.muli %arg0, %c1_i32 : i32
    %1 = arith.addi %0, %arg1 : i32
    %2 = arith.index_cast %1 : i32 to index
    %3 = memref.load %arg2[%2] : memref<1xi32, #tpu.memory_space<smem>>
    %c0_i32 = arith.constant 0 : i32
    return %arg0, %3 : i32, i32
  }
  func.func @transform_5(%arg0: i32, %arg1: i32, %arg2: memref<1xi32, #tpu.memory_space<smem>>, %arg3: memref<1xi32, #tpu.memory_space<smem>>) -> (i32, i32) {
    %c0_i32 = arith.constant 0 : i32
    %c0_i32_0 = arith.constant 0 : i32
    return %arg0, %c0_i32 : i32, i32
  }
}

module attributes {stable_mosaic.version = 11 : i64} {
  func.func @gat_project_kernel(%arg0: i32, %arg1: memref<128x128xf32, #tpu.memory_space<vmem>>, %arg2: memref<128x128xf32, #tpu.memory_space<vmem>>, %arg3: memref<128x2xf32, #tpu.memory_space<vmem>>, %arg4: memref<128x128xbf16, #tpu.memory_space<vmem>>, %arg5: memref<128x2xf32, #tpu.memory_space<vmem>>) attributes {dimension_semantics = [#tpu.dimension_semantics<parallel>], iteration_bounds = array<i64: 1>, scalar_prefetch = 0 : i64, scratch_operands = 0 : i64, tpu.core_type = #tpu.core_type<tc>, window_params = [{transform_indices = @transform_0, window_bounds = array<i64: 128, 128>}, {pipeline_mode = #tpu.pipeline_mode<synchronous>, transform_indices = @transform_1, window_bounds = array<i64: 128, 128>}, {pipeline_mode = #tpu.pipeline_mode<synchronous>, transform_indices = @transform_2, window_bounds = array<i64: 128, 2>}, {transform_indices = @transform_3, window_bounds = array<i64: 128, 128>}, {transform_indices = @transform_4, window_bounds = array<i64: 128, 2>}]} {
    %c0 = arith.constant 0 : index
    %c0_0 = arith.constant 0 : index
    %0 = vector.load %arg1[%c0, %c0_0] : memref<128x128xf32, #tpu.memory_space<vmem>>, vector<128x128xf32>
    %1 = arith.truncf %0 : vector<128x128xf32> to vector<128x128xbf16>
    %c0_1 = arith.constant 0 : index
    %c0_2 = arith.constant 0 : index
    %2 = vector.load %arg2[%c0_1, %c0_2] : memref<128x128xf32, #tpu.memory_space<vmem>>, vector<128x128xf32>
    %3 = arith.truncf %2 : vector<128x128xf32> to vector<128x128xbf16>
    %cst = arith.constant dense<0.000000e+00> : vector<128x128xf32>
    %4 = tpu.matmul %1, %3, %cst {dimension_numbers = #tpu.dot_dimension_numbers<[1], [0], [0], [1], [0, 0, 1, 1], [], []>} : vector<128x128xbf16>, vector<128x128xbf16>, vector<128x128xf32> -> vector<128x128xf32>
    %c0_3 = arith.constant 0 : index
    %c0_4 = arith.constant 0 : index
    %5 = vector.load %arg3[%c0_3, %c0_4] : memref<128x2xf32, #tpu.memory_space<vmem>>, vector<128x2xf32>
    %cst_5 = arith.constant dense<0.000000e+00> : vector<128x2xf32>
    %6 = tpu.matmul %4, %5, %cst_5 {dimension_numbers = #tpu.dot_dimension_numbers<[1], [0], [0], [1], [0, 0, 1, 1], [], []>} : vector<128x128xf32>, vector<128x2xf32>, vector<128x2xf32> -> vector<128x2xf32>
    %c0_6 = arith.constant 0 : index
    %c0_7 = arith.constant 0 : index
    %7 = vector.load %arg5[%c0_6, %c0_7] : memref<128x2xf32, #tpu.memory_space<vmem>>, vector<128x2xf32>
    tpu.vector_store %arg5[%c0_6, %c0_7], %6 {strides = array<i32>} : memref<128x2xf32, #tpu.memory_space<vmem>>, vector<128x2xf32>,
    %8 = tpu.iota {dimensions = array<i32: 1>} : vector<128x128xi32>
    %c32_i32 = arith.constant 32 : i32
    %9 = vector.broadcast %c32_i32 : i32 to vector<128x128xi32>
    %10 = arith.cmpi eq, %8, %9 : vector<128x128xi32>
    %cst_8 = arith.constant 1.000000e+00 : f32
    %11 = vector.broadcast %cst_8 : f32 to vector<128x128xf32>
    %12 = arith.select %10, %11, %4 : vector<128x128xi1>, vector<128x128xf32>
    %13 = arith.truncf %12 : vector<128x128xf32> to vector<128x128xbf16>
    %c0_9 = arith.constant 0 : index
    %c0_10 = arith.constant 0 : index
    %14 = vector.load %arg4[%c0_9, %c0_10] : memref<128x128xbf16, #tpu.memory_space<vmem>>, vector<128x128xbf16>
    tpu.vector_store %arg4[%c0_9, %c0_10], %13 {strides = array<i32>} : memref<128x128xbf16, #tpu.memory_space<vmem>>, vector<128x128xbf16>,
    return
  }
  func.func @transform_0(%arg0: i32) -> (i32, i32) {
    %c0_i32 = arith.constant 0 : i32
    %c0_i32_0 = arith.constant 0 : i32
    return %arg0, %c0_i32 : i32, i32
  }
  func.func @transform_1(%arg0: i32) -> (i32, i32) {
    %c0_i32 = arith.constant 0 : i32
    %c0_i32_0 = arith.constant 0 : i32
    %c0_i32_1 = arith.constant 0 : i32
    return %c0_i32, %c0_i32_0 : i32, i32
  }
  func.func @transform_2(%arg0: i32) -> (i32, i32) {
    %c0_i32 = arith.constant 0 : i32
    %c0_i32_0 = arith.constant 0 : i32
    %c0_i32_1 = arith.constant 0 : i32
    return %c0_i32, %c0_i32_0 : i32, i32
  }
  func.func @transform_3(%arg0: i32) -> (i32, i32) {
    %c0_i32 = arith.constant 0 : i32
    %c0_i32_0 = arith.constant 0 : i32
    return %arg0, %c0_i32 : i32, i32
  }
  func.func @transform_4(%arg0: i32) -> (i32, i32) {
    %c0_i32 = arith.constant 0 : i32
    %c0_i32_0 = arith.constant 0 : i32
    return %arg0, %c0_i32 : i32, i32
  }
}

module attributes {stable_mosaic.version = 11 : i64} {
  func.func @mean_pool_kernel(%arg0: i32, %arg1: memref<8x128xf32, #tpu.memory_space<vmem>>, %arg2: memref<128x96xf32, #tpu.memory_space<vmem>>, %arg3: memref<8x96xf32, #tpu.memory_space<vmem>>) attributes {dimension_semantics = [#tpu.dimension_semantics<arbitrary>], iteration_bounds = array<i64: 1>, scalar_prefetch = 0 : i64, scratch_operands = 0 : i64, tpu.core_type = #tpu.core_type<tc>, window_params = [{transform_indices = @transform_0, window_bounds = array<i64: 8, 128>}, {transform_indices = @transform_1, window_bounds = array<i64: 128, 96>}, {pipeline_mode = #tpu.pipeline_mode<synchronous>, transform_indices = @transform_2, window_bounds = array<i64: 8, 96>}]} {
    %c0_i32 = arith.constant 0 : i32
    %0 = arith.cmpi eq, %arg0, %c0_i32 : i32
    %1 = arith.extui %0 : i1 to i32
    %c0_i32_0 = arith.constant 0 : i32
    %2 = arith.cmpi ne, %1, %c0_i32_0 : i32
    scf.if %2 {
      %cst_8 = arith.constant 0.000000e+00 : f32
      %9 = vector.broadcast %cst_8 : f32 to vector<8x96xf32>
      %c0_9 = arith.constant 0 : index
      %c0_10 = arith.constant 0 : index
      %10 = vector.load %arg3[%c0_9, %c0_10] : memref<8x96xf32, #tpu.memory_space<vmem>>, vector<8x96xf32>
      tpu.vector_store %arg3[%c0_9, %c0_10], %9 {strides = array<i32>} : memref<8x96xf32, #tpu.memory_space<vmem>>, vector<8x96xf32>,
    } else {
    }
    %c0 = arith.constant 0 : index
    %c0_1 = arith.constant 0 : index
    %3 = vector.load %arg3[%c0, %c0_1] : memref<8x96xf32, #tpu.memory_space<vmem>>, vector<8x96xf32>
    %c0_2 = arith.constant 0 : index
    %c0_3 = arith.constant 0 : index
    %4 = vector.load %arg1[%c0_2, %c0_3] : memref<8x128xf32, #tpu.memory_space<vmem>>, vector<8x128xf32>
    %c0_4 = arith.constant 0 : index
    %c0_5 = arith.constant 0 : index
    %5 = vector.load %arg2[%c0_4, %c0_5] : memref<128x96xf32, #tpu.memory_space<vmem>>, vector<128x96xf32>
    %cst = arith.constant dense<0.000000e+00> : vector<8x96xf32>
    %6 = tpu.matmul %4, %5, %cst {dimension_numbers = #tpu.dot_dimension_numbers<[1], [0], [0], [1], [0, 0, 1, 1], [], []>} : vector<8x128xf32>, vector<128x96xf32>, vector<8x96xf32> -> vector<8x96xf32>
    %7 = arith.addf %3, %6 : vector<8x96xf32>
    %c0_6 = arith.constant 0 : index
    %c0_7 = arith.constant 0 : index
    %8 = vector.load %arg3[%c0_6, %c0_7] : memref<8x96xf32, #tpu.memory_space<vmem>>, vector<8x96xf32>
    tpu.vector_store %arg3[%c0_6, %c0_7], %7 {strides = array<i32>} : memref<8x96xf32, #tpu.memory_space<vmem>>, vector<8x96xf32>,
    return
  }
  func.func @transform_0(%arg0: i32) -> (i32, i32) {
    %c0_i32 = arith.constant 0 : i32
    %c0_i32_0 = arith.constant 0 : i32
    return %c0_i32, %arg0 : i32, i32
  }
  func.func @transform_1(%arg0: i32) -> (i32, i32) {
    %c0_i32 = arith.constant 0 : i32
    %c0_i32_0 = arith.constant 0 : i32
    return %arg0, %c0_i32 : i32, i32
  }
  func.func @transform_2(%arg0: i32) -> (i32, i32) {
    %c0_i32 = arith.constant 0 : i32
    %c0_i32_0 = arith.constant 0 : i32
    %c0_i32_1 = arith.constant 0 : i32
    return %c0_i32, %c0_i32_0 : i32, i32
  }
}

</mosaic_0001>

<bundles_post_ra>
// kernel: encoder_gat_forward.7
= control target key start
LH: loop header
LB: loop body
LE: loop exit
PB: predicated region body
PF: predicated region fallthrough
CT: control target
= control target key end

     0   :  { %vm68_vm0 = vcmask 1043456   ;;  %vm43_vm1 = vcmask 64512   ;;  %v347_v51 = vlaneseq  ;;  %vm330_vm3 = vcmask 15360   ;;  %s941_s1 = inlined_call_operand.vmem [shape: f32[8,128], index: 1, kind: input, shape index: {}]   ;;  %s942_s0 = inlined_call_operand.vmem [shape: f32[128,8], index: 0, kind: input, shape index: {}]   ;;  %s943_s2 = inlined_call_operand.vmem [shape: f32[128,2], index: 2, kind: input, shape index: {}]   ;;  %s944_s3 = inlined_call_operand.vmem [shape: bf16[128,128], index: 3, kind: output, shape index: {0}]   ;;  %s945_s4 = inlined_call_operand.vmem [shape: f32[128,2], index: 4, kind: output, shape index: {1}]  }
   0x1   :  { %v41_v0 = vld [vmem:[%s941_s1] sm:$0xff]  ;;  %v18_v2 = vld [vmem:[%s942_s0 + $0x8] sm:$0xff]  ;;  %v19_v5 = vld [vmem:[%s942_s0 + $0x10] sm:$0xff] }
   0x2   :  { %v17_v1 = vld [vmem:[%s942_s0] sm:$0xff]  ;;  %v42_v3 = vpack.c.bf16 %v41_v0, %v41_v0  ;;  %v20_v6 = vld [vmem:[%s942_s0 + $0x18] sm:$0xff]  ;;  %v22_v8 = vld [vmem:[%s942_s0 + $0x28] sm:$0xff]  ;;  %v348_v52 = vand.u32 127, %v347_v51 }
   0x3   :  { %v33_v4 = vpack.c.bf16 %v18_v2, %v17_v1  ;;  %v21_v7 = vld [vmem:[%s942_s0 + $0x20] sm:$0xff]  ;;  %v34_v10 = vpack.c.bf16 %v20_v6, %v19_v5  ;;  %v170_v13 = vld [vmem:[%s943_s2 + $0x8] sm:$0xff]  ;;  %v171_v14 = vld [vmem:[%s943_s2 + $0x10] sm:$0xff] }
   0x4   :  { %704 = vmatprep.subr.msk.bf16.mxu0 %vm68_vm0, %v42_v3  ;;  %v70_v9 = vsel %vm68_vm0, %v42_v3, 0  ;;  %v35_v11 = vpack.c.bf16 %v22_v8, %v21_v7  ;;  %v169_v12 = vld [vmem:[%s943_s2] sm:$0xff]  ;;  %v172_v15 = vld [vmem:[%s943_s2 + $0x18] sm:$0xff]  ;;  %v23_v16 = vld [vmem:[%s942_s0 + $0x30] sm:$0xff]  ;;  %vm349_vm2 = vcmp.eq.s32.totalorder %v348_v52, 32 }
   0x5   :  { %584 = vmatprep.mubr.msk.bf16.mxu0 %vm43_vm1, %v33_v4  ;;  %583 = vmatpush3.bf16.msra.mxu0 %v70_v9  ;;  %v656_v17 = vpack.c.bf16 %v170_v13, %v169_v12  ;;  %v660_v18 = vpack.c.bf16 %v172_v15, %v171_v14  ;;  %v24_v19 = vld [vmem:[%s942_s0 + $0x38] sm:$0xff]  ;;  %v173_v20 = vld [vmem:[%s943_s2 + $0x20] sm:$0xff]  ;;  %v174_v21 = vld [vmem:[%s943_s2 + $0x28] sm:$0xff] }
   0x6   :  { %v25_v22 = vld [vmem:[%s942_s0 + $0x40] sm:$0xff]  ;;  %v26_v23 = vld [vmem:[%s942_s0 + $0x48] sm:$0xff]  ;;  %v36_v24 = vpack.c.bf16 %v24_v19, %v23_v16  ;;  %v664_v25 = vpack.c.bf16 %v174_v21, %v173_v20  ;;  %v175_v27 = vld [vmem:[%s943_s2 + $0x30] sm:$0xff] }
   0x7   :  { %657 = vmatprep.subr.bf16.mxu0 %v656_v17  ;;  %688 = vmatprep.subr.bf16.mxu1 %v656_v17  ;;  %v37_v26 = vpack.c.bf16 %v26_v23, %v25_v22  ;;  %v176_v28 = vld [vmem:[%s943_s2 + $0x38] sm:$0xff]  ;;  %v27_v29 = vld [vmem:[%s942_s0 + $0x50] sm:$0xff]  ;;  %v177_v32 = vld [vmem:[%s943_s2 + $0x40] sm:$0xff] }
   0x8   :  { %585 = vmatmul.mubr.msk.bf16.vlgmr.msra.gmra.mrb[0].mxu0 %vm43_vm1, %v34_v10  ;;  %696 = vmatpush3.bf16.msra.mxu1 %v656_v17  ;;  %v668_v30 = vpack.c.bf16 %v176_v28, %v175_v27  ;;  %v28_v31 = vld [vmem:[%s942_s0 + $0x58] sm:$0xff]  ;;  %v178_v33 = vld [vmem:[%s943_s2 + $0x48] sm:$0xff]  ;;  %v29_v34 = vld [vmem:[%s942_s0 + $0x60] sm:$0xff] }
   0x9   :  { %588 = vmatprep.mubr.msk.bf16.mxu0 %vm43_vm1, %v35_v11  ;;  %659 = vmatpush3.bf16.msra.mxu0 %v656_v17  ;;  %v30_v35 = vld [vmem:[%s942_s0 + $0x68] sm:$0xff]  ;;  %v38_v36 = vpack.c.bf16 %v28_v31, %v27_v29  ;;  %v672_v37 = vpack.c.bf16 %v178_v33, %v177_v32  ;;  %v179_v39 = vld [vmem:[%s943_s2 + $0x50] sm:$0xff]  ;;  %v180_v40 = vld [vmem:[%s943_s2 + $0x58] sm:$0xff] }
   0xa   :  { %661 = vmatprep.subr.bf16.mxu0 %v660_v18  ;;  %689 = vmatprep.subr.bf16.mxu1 %v660_v18  ;;  %v39_v38 = vpack.c.bf16 %v30_v35, %v29_v34  ;;  %v31_v41 = vld [vmem:[%s942_s0 + $0x70] sm:$0xff]  ;;  %v676_v42 = vpack.c.bf16 %v180_v40, %v179_v39  ;;  %v32_v43 = vld [vmem:[%s942_s0 + $0x78] sm:$0xff]  ;;  %v181_v44 = vld [vmem:[%s943_s2 + $0x60] sm:$0xff] }
   0xb   :  { %v182_v45 = vld [vmem:[%s943_s2 + $0x68] sm:$0xff]  ;;  %v40_v46 = vpack.c.bf16 %v32_v43, %v31_v41  ;;  %v183_v48 = vld [vmem:[%s943_s2 + $0x70] sm:$0xff]  ;;  %v184_v49 = vld [vmem:[%s943_s2 + $0x78] sm:$0xff] }
   0xc   :  { %697 = vmatpush3.bf16.msra.mxu1 %v660_v18  ;;  %v680_v47 = vpack.c.bf16 %v182_v45, %v181_v44  ;;  %v684_v50 = vpack.c.bf16 %v184_v49, %v183_v48 }
   0xd   :  { %663 = vmatpush3.bf16.msra.mxu0 %v660_v18  ;;  %690 = vmatprep.subr.bf16.mxu1 %v664_v25 }
   0xe   :  { %665 = vmatprep.subr.bf16.mxu0 %v664_v25 }
  0x10   :  { %589 = vmatmul.mubr.msk.bf16.gmra.mrb[4].mxu0 %vm43_vm1, %v36_v24  ;;  %698 = vmatpush3.bf16.msra.mxu1 %v664_v25 }
  0x11   :  { %592 = vmatprep.mubr.msk.bf16.mxu0 %vm43_vm1, %v37_v26  ;;  %667 = vmatpush3.bf16.msra.mxu0 %v664_v25 }
  0x12   :  { %669 = vmatprep.subr.bf16.mxu0 %v668_v30  ;;  %691 = vmatprep.subr.bf16.mxu1 %v668_v30 }
  0x14   :  { %699 = vmatpush3.bf16.msra.mxu1 %v668_v30 }
  0x15   :  { %671 = vmatpush3.bf16.msra.mxu0 %v668_v30  ;;  %692 = vmatprep.subr.bf16.mxu1 %v672_v37 }
  0x16   :  { %673 = vmatprep.subr.bf16.mxu0 %v672_v37 }
  0x18   :  { %593 = vmatmul.mubr.msk.bf16.gmra.mrb[8].mxu0 %vm43_vm1, %v38_v36  ;;  %700 = vmatpush3.bf16.msra.mxu1 %v672_v37 }
  0x19   :  { %596 = vmatprep.mubr.msk.bf16.mxu0 %vm43_vm1, %v39_v38  ;;  %675 = vmatpush3.bf16.msra.mxu0 %v672_v37 }
  0x1a   :  { %677 = vmatprep.subr.bf16.mxu0 %v676_v42  ;;  %693 = vmatprep.subr.bf16.mxu1 %v676_v42 }
  0x1c   :  { %701 = vmatpush3.bf16.msra.mxu1 %v676_v42 }
  0x1d   :  { %679 = vmatpush3.bf16.msra.mxu0 %v676_v42  ;;  %694 = vmatprep.subr.bf16.mxu1 %v680_v47 }
  0x1e   :  { %681 = vmatprep.subr.bf16.mxu0 %v680_v47 }
  0x20   :  { %597 = vmatmul.mubr.msk.bf16.gmra.mrb[12].mxu0 %vm43_vm1, %v40_v46  ;;  %702 = vmatpush3.bf16.msra.mxu1 %v680_v47 }
  0x21   :  { %683 = vmatpush3.bf16.msra.mxu0 %v680_v47  ;;  %695 = vmatprep.subr.bf16.mxu1 %v684_v50 }
  0x22   :  { %685 = vmatprep.subr.bf16.mxu0 %v684_v50 }
  0x24   :  { %703 = vmatpush3.bf16.msra.mxu1 %v684_v50 }
  0x25   :  { %687 = vmatpush3.bf16.msra.mxu0 %v684_v50 }
  0xdb   :  { %v586_v53 = vpop.f32.mrb[0].mxu0 }
  0xdc   :  { %v106_v54 = vpop.f32.mrb[1].mxu0  ;;  %v352_v56 = vsel %vm349_vm2, 1.0, %v586_v53 }
  0xdd   :  { %v587_v55 = vpop.f32.mrb[2].mxu0  ;;  %632 = vmatprep.mubr.f32.mxu0 %v106_v54  ;;  %v350_v59 = vsel %vm349_vm2, 1.0, %v106_v54 }
  0xde   :  { %v353_v57 = vsel %vm349_vm2, 1.0, %v587_v55  ;;  %v109_v58 = vpop.f32.mrb[3].mxu0 }
  0xdf   :  { %v502_v60 = vpack.c.bf16 %v353_v57, %v352_v56  ;;  %v351_v61 = vsel %vm349_vm2, 1.0, %v109_v58  ;;  %633 = vmatmul.mubr.f32.vlgmr.msra.gmra.mrb[16].mxu0 %v109_v58 }
  0xe0   :  { %v497_v62 = vpack.c.bf16 %v351_v61, %v350_v59  ;;  %635 = vmatprep.mubr.f32.mxu0 %v586_v53 }
  0xe1   :  { %534 = vst [vmem:[%s944_s3 + $0x8] sm:$0xff] %v502_v60  }
  0xe2   :  { %498 = vst [vmem:[%s944_s3] sm:$0xff] %v497_v62  }
  0xe3   :  { %v590_v63 = vpop.f32.mrb[4].mxu0  ;;  %636 = vmatmul.mubr.f32.gmra.mrb[18].mxu0 %v587_v55 }
  0xe4   :  { %v122_v0 = vpop.f32.mrb[5].mxu0  ;;  %641 = vmatprep.mubr.f32.mxu1 %v590_v63  ;;  %v356_v2 = vsel %vm349_vm2, 1.0, %v590_v63 }
  0xe5   :  { %v591_v1 = vpop.f32.mrb[6].mxu0  ;;  %638 = vmatprep.mubr.f32.mxu0 %v122_v0  ;;  %v354_v5 = vsel %vm349_vm2, 1.0, %v122_v0 }
  0xe6   :  { %v357_v3 = vsel %vm349_vm2, 1.0, %v591_v1  ;;  %v125_v4 = vpop.f32.mrb[7].mxu0  ;;  %642 = vmatmul.mubr.f32.vlgmr.msra.gmra.mrb[0].mxu1 %v591_v1 }
  0xe7   :  { %v512_v6 = vpack.c.bf16 %v357_v3, %v356_v2  ;;  %v355_v7 = vsel %vm349_vm2, 1.0, %v125_v4  ;;  %639 = vmatmul.mubr.f32.gmra.mrb[20].mxu0 %v125_v4 }
  0xe8   :  { %v507_v8 = vpack.c.bf16 %v355_v7, %v354_v5 }
  0xe9   :  { %536 = vst [vmem:[%s944_s3 + $0x18] sm:$0xff] %v512_v6  }
  0xea   :  { %535 = vst [vmem:[%s944_s3 + $0x10] sm:$0xff] %v507_v8  }
  0xeb   :  { %v594_v9 = vpop.f32.mrb[8].mxu0 }
  0xec   :  { %v138_v10 = vpop.f32.mrb[9].mxu0  ;;  %v360_v12 = vsel %vm349_vm2, 1.0, %v594_v9 }
  0xed   :  { %v595_v11 = vpop.f32.mrb[10].mxu0  ;;  %644 = vmatprep.mubr.f32.mxu1 %v138_v10  ;;  %v358_v15 = vsel %vm349_vm2, 1.0, %v138_v10 }
  0xee   :  { %v361_v13 = vsel %vm349_vm2, 1.0, %v595_v11  ;;  %v141_v14 = vpop.f32.mrb[11].mxu0 }
  0xef   :  { %v522_v16 = vpack.c.bf16 %v361_v13, %v360_v12  ;;  %v359_v17 = vsel %vm349_vm2, 1.0, %v141_v14  ;;  %645 = vmatmul.mubr.f32.gmra.mrb[2].mxu1 %v141_v14 }
  0xf0   :  { %v517_v18 = vpack.c.bf16 %v359_v17, %v358_v15  ;;  %647 = vmatprep.mubr.f32.mxu1 %v594_v9 }
  0xf1   :  { %538 = vst [vmem:[%s944_s3 + $0x28] sm:$0xff] %v522_v16  }
  0xf2   :  { %537 = vst [vmem:[%s944_s3 + $0x20] sm:$0xff] %v517_v18  }
  0xf3   :  { %v598_v19 = vpop.f32.mrb[12].mxu0  ;;  %648 = vmatmul.mubr.f32.gmra.mrb[4].mxu1 %v595_v11 }
  0xf4   :  { %v154_v20 = vpop.f32.mrb[13].mxu0  ;;  %v364_v22 = vsel %vm349_vm2, 1.0, %v598_v19 }
  0xf5   :  { %v599_v21 = vpop.f32.mrb[14].mxu0  ;;  %650 = vmatprep.mubr.f32.mxu1 %v154_v20  ;;  %v362_v25 = vsel %vm349_vm2, 1.0, %v154_v20 }
  0xf6   :  { %v365_v23 = vsel %vm349_vm2, 1.0, %v599_v21  ;;  %v157_v24 = vpop.f32.mrb[15].mxu0 }
  0xf7   :  { %v532_v26 = vpack.c.bf16 %v365_v23, %v364_v22  ;;  %v363_v27 = vsel %vm349_vm2, 1.0, %v157_v24  ;;  %651 = vmatmul.mubr.f32.gmra.mrb[6].mxu1 %v157_v24 }
  0xf8   :  { %v527_v28 = vpack.c.bf16 %v363_v27, %v362_v25  ;;  %653 = vmatprep.mubr.f32.mxu1 %v598_v19 }
  0xf9   :  { %540 = vst [vmem:[%s944_s3 + $0x38] sm:$0xff] %v532_v26  }
  0xfa   :  { %539 = vst [vmem:[%s944_s3 + $0x30] sm:$0xff] %v527_v28  }
  0xfb   :  { %654 = vmatmul.mubr.f32.gmra.mrb[8].mxu1 %v599_v21 }
 0x1b2   :  { %v634_v29 = vpop.f32.mrb[16].mxu0 }
 0x1b3   :  { %332 = vst.msk [vmem:[%s945_s4 + $0x8] sm:$0xff] %vm330_vm3, %v634_v29  ;;  %v251_v30 = vpop.f32.mrb[17].mxu0 }
 0x1b4   :  { %331 = vst.msk [vmem:[%s945_s4] sm:$0xff] %vm330_vm3, %v251_v30 }
 0x1b6   :  { %v637_v31 = vpop.f32.mrb[18].mxu0 }
 0x1b7   :  { %334 = vst.msk [vmem:[%s945_s4 + $0x18] sm:$0xff] %vm330_vm3, %v637_v31  ;;  %v261_v32 = vpop.f32.mrb[19].mxu0 }
 0x1b8   :  { %333 = vst.msk [vmem:[%s945_s4 + $0x10] sm:$0xff] %vm330_vm3, %v261_v32 }
 0x1b9   :  { %v643_v33 = vpop.f32.mrb[0].mxu1 }
 0x1ba   :  { %338 = vst.msk [vmem:[%s945_s4 + $0x38] sm:$0xff] %vm330_vm3, %v643_v33  ;;  %v640_v34 = vpop.f32.mrb[20].mxu0  ;;  %v281_v35 = vpop.f32.mrb[1].mxu1 }
 0x1bb   :  { %336 = vst.msk [vmem:[%s945_s4 + $0x28] sm:$0xff] %vm330_vm3, %v640_v34  ;;  %337 = vst.msk [vmem:[%s945_s4 + $0x30] sm:$0xff] %vm330_vm3, %v281_v35  ;;  %v271_v36 = vpop.f32.mrb[21].mxu0 }
 0x1bc   :  { %335 = vst.msk [vmem:[%s945_s4 + $0x20] sm:$0xff] %vm330_vm3, %v271_v36 }
 0x1c2   :  { %v646_v37 = vpop.f32.mrb[2].mxu1 }
 0x1c3   :  { %340 = vst.msk [vmem:[%s945_s4 + $0x48] sm:$0xff] %vm330_vm3, %v646_v37  ;;  %v291_v38 = vpop.f32.mrb[3].mxu1 }
 0x1c4   :  { %339 = vst.msk [vmem:[%s945_s4 + $0x40] sm:$0xff] %vm330_vm3, %v291_v38 }
 0x1c6   :  { %v649_v39 = vpop.f32.mrb[4].mxu1 }
 0x1c7   :  { %342 = vst.msk [vmem:[%s945_s4 + $0x58] sm:$0xff] %vm330_vm3, %v649_v39  ;;  %v301_v40 = vpop.f32.mrb[5].mxu1 }
 0x1c8   :  { %341 = vst.msk [vmem:[%s945_s4 + $0x50] sm:$0xff] %vm330_vm3, %v301_v40 }
 0x1ca   :  { %v652_v41 = vpop.f32.mrb[6].mxu1 }
 0x1cb   :  { %344 = vst.msk [vmem:[%s945_s4 + $0x68] sm:$0xff] %vm330_vm3, %v652_v41  ;;  %v311_v42 = vpop.f32.mrb[7].mxu1 }
 0x1cc   :  { %343 = vst.msk [vmem:[%s945_s4 + $0x60] sm:$0xff] %vm330_vm3, %v311_v42 }
 0x1ce   :  { %v655_v43 = vpop.f32.mrb[8].mxu1 }
 0x1cf   :  { %346 = vst.msk [vmem:[%s945_s4 + $0x78] sm:$0xff] %vm330_vm3, %v655_v43  ;;  %v321_v44 = vpop.f32.mrb[9].mxu1 }
 0x1d0   :  { %345 = vst.msk [vmem:[%s945_s4 + $0x70] sm:$0xff] %vm330_vm3, %v321_v44 }

// kernel: encoder_gat_forward.8
= control target key start
LH: loop header
LB: loop body
LE: loop exit
PB: predicated region body
PF: predicated region fallthrough
CT: control target
= control target key end

     0   :  { %vm71_vm0 = vcmask 7168   ;;  %v1315_v0 = vmov -1e+30   ;;  %v1316_v1 = vmov 0.0   ;;  %s1848_s0 = inlined_call_operand.<no memory space> [shape: s32[1], index: 0, kind: input, shape index: {}]   ;;  %s1849_s1 = inlined_call_operand.<no memory space> [shape: s32[1], index: 1, kind: input, shape index: {}]   ;;  %s1850_s2 = inlined_call_operand.vmem [shape: f32[128,1], index: 2, kind: input, shape index: {}]   ;;  %s1851_s4 = inlined_call_operand.vmem [shape: bf16[128,128], index: 4, kind: input, shape index: {}]   ;;  %s1852_s5 = inlined_call_operand.vmem [shape: f32[1,128], index: 5, kind: input, shape index: {}]   ;;  %s1853_s7 = inlined_call_operand.vmem [shape: f32[128,128], index: 7, kind: output, shape index: {}]   ;;  %s1854_s3 = inlined_call_operand.vmem [shape: f32[1,128], index: 3, kind: input, shape index: {}]   ;;  %s1855_s6 = inlined_call_operand.vmem [shape: bf16[128,128], index: 6, kind: input, shape index: {}]  }
   0x1   :  { %12 = sst [smem:[#allocation5]] %s1848_s0  ;;  %p52_p0 = scmp.lt.s32.totalorder %s1848_s0, 0  ;;  %72 = vst.msk [vmem:[#allocation2] sm:$0xff] %vm71_vm0, %v1315_v0  ;;  %73 = vst.msk [vmem:[#allocation2 + $0x8] sm:$0xff] %vm71_vm0, %v1315_v0 }
   0x2   :  { %74 = vst.msk [vmem:[#allocation2 + $0x10] sm:$0xff] %vm71_vm0, %v1315_v0  ;;  %75 = vst.msk [vmem:[#allocation2 + $0x18] sm:$0xff] %vm71_vm0, %v1315_v0  ;;  %p1100_p1 = scmp.le.s32.totalorder %s1849_s1, 0 }
   0x3   :  { %76 = vst.msk [vmem:[#allocation2 + $0x20] sm:$0xff] %vm71_vm0, %v1315_v0  ;;  %77 = vst.msk [vmem:[#allocation2 + $0x28] sm:$0xff] %vm71_vm0, %v1315_v0  ;;  %s1857_s0 = smov (!%p52_p0, %s1848_s0), 0  ;;  %v116_v2 = vld [vmem:[%s1850_s2 + $0x40] sm:$0xff] (!%p1100_p1)  ;;  %v1317_v4 = vmov (!%p1100_p1), 0   ;;  %v117_v5 = vld [vmem:[%s1850_s2 + $0x48] sm:$0xff] (!%p1100_p1) }
   0x4   :  { %78 = vst.msk [vmem:[#allocation2 + $0x30] sm:$0xff] %vm71_vm0, %v1315_v0  ;;  %79 = vst.msk [vmem:[#allocation2 + $0x38] sm:$0xff] %vm71_vm0, %v1315_v0  ;;  %s54_s11 = scalar_lea.vmem %s1854_s3, %s1857_s0  ;;  %s1098_s12 = sshll.u32 %s1857_s0, 2  ;;  %v108_v3 = vld [vmem:[%s1850_s2] sm:$0xff] (!%p1100_p1)  ;;  %1224 = vset.pattern.permute.xlu1 (!%p1100_p1), %v1317_v4  ;;  %1223 = vset.pattern.permute.xlu0 (!%p1100_p1), %v1317_v4  ;;  %v109_v6 = vld [vmem:[%s1850_s2 + $0x8] sm:$0xff] (!%p1100_p1) }
   0x5   :  { %80 = vst.msk [vmem:[#allocation2 + $0x40] sm:$0xff] %vm71_vm0, %v1315_v0  ;;  %81 = vst.msk [vmem:[#allocation2 + $0x48] sm:$0xff] %vm71_vm0, %v1315_v0  ;;  %s1398_s15 = scalar_lea.vmem %s1855_s6, %s1098_s12  ;;  %167 = vperm.xlu1 (!%p1100_p1), %1224, %v116_v2   ;;  %127 = vperm.xlu0 (!%p1100_p1), %1223, %v108_v3   ;;  %v111_v7 = vld [vmem:[%s1850_s2 + $0x18] sm:$0xff] (!%p1100_p1)  ;;  %v110_v8 = vld [vmem:[%s1850_s2 + $0x10] sm:$0xff] (!%p1100_p1)  ;;  %s548_s0 = sld [smem:[#allocation5]] (!%p1100_p1) }
   0x6   :  { %82 = vst.msk [vmem:[#allocation2 + $0x50] sm:$0xff] %vm71_vm0, %v1315_v0  ;;  %83 = vst.msk [vmem:[#allocation2 + $0x58] sm:$0xff] %vm71_vm0, %v1315_v0  ;;  %v119_v9 = vld [vmem:[%s1850_s2 + $0x58] sm:$0xff] (!%p1100_p1)  ;;  %v118_v10 = vld [vmem:[%s1850_s2 + $0x50] sm:$0xff] (!%p1100_p1) }
   0x7   :  { %84 = vst.msk [vmem:[#allocation2 + $0x60] sm:$0xff] %vm71_vm0, %v1315_v0  ;;  %85 = vst.msk [vmem:[#allocation2 + $0x68] sm:$0xff] %vm71_vm0, %v1315_v0  ;;  %v113_v11 = vld [vmem:[%s1850_s2 + $0x28] sm:$0xff] (!%p1100_p1)  ;;  %v112_v12 = vld [vmem:[%s1850_s2 + $0x20] sm:$0xff] (!%p1100_p1) }
   0x8   :  { %86 = vst.msk [vmem:[#allocation2 + $0x70] sm:$0xff] %vm71_vm0, %v1315_v0  ;;  %87 = vst.msk [vmem:[#allocation2 + $0x78] sm:$0xff] %vm71_vm0, %v1315_v0  ;;  %v121_v13 = vld [vmem:[%s1850_s2 + $0x68] sm:$0xff] (!%p1100_p1)  ;;  %v120_v14 = vld [vmem:[%s1850_s2 + $0x60] sm:$0xff] (!%p1100_p1) }
   0x9   :  { %88 = vst [vmem:[#allocation3] sm:$0xff] %v1316_v1  ;;  %89 = vst [vmem:[#allocation3 + $0x8] sm:$0xff] %v1316_v1  ;;  %172 = vperm.xlu1 (!%p1100_p1), %1224, %v117_v5   ;;  %132 = vperm.xlu0 (!%p1100_p1), %1223, %v109_v6   ;;  %v115_v15 = vld [vmem:[%s1850_s2 + $0x38] sm:$0xff] (!%p1100_p1)  ;;  %v114_v16 = vld [vmem:[%s1850_s2 + $0x30] sm:$0xff] (!%p1100_p1) }
   0xa   :  { %90 = vst [vmem:[#allocation3 + $0x10] sm:$0xff] %v1316_v1  ;;  %91 = vst [vmem:[#allocation3 + $0x18] sm:$0xff] %v1316_v1  ;;  %107 = sbr.rel (%p1100_p1) target bundleno = 681 (0x2a9), region = 29  ;;  %v123_v17 = vld [vmem:[%s1850_s2 + $0x78] sm:$0xff] (!%p1100_p1)  ;;  %v122_v18 = vld [vmem:[%s1850_s2 + $0x70] sm:$0xff] (!%p1100_p1) }
   0xb   :  { %92 = vst [vmem:[#allocation3 + $0x20] sm:$0xff] %v1316_v1  ;;  %93 = vst [vmem:[#allocation3 + $0x28] sm:$0xff] %v1316_v1  ;;  %v1456_v19 = vld [vmem:[%s54_s11] ss:$0 sm:$0xff] (!%p1100_p1)  ;;  %v1148_v40 = vld [vmem:[%s1398_s15 + $0x8] sm:$0xff] (!%p1100_p1)   ;;  %s1102_s2 = sshll.u32 (!%p1100_p1), %s548_s0, 7 }
   0xc   :  { %94 = vst [vmem:[#allocation3 + $0x30] sm:$0xff] %v1316_v1  ;;  %95 = vst [vmem:[#allocation3 + $0x38] sm:$0xff] %v1316_v1  ;;  %v1117_v22 = vld [vmem:[%s1398_s15] sm:$0xff] (!%p1100_p1)   ;;  %v1122_v48 = vunpack.c.l.bf16 (!%p1100_p1), %v1148_v40  ;;  %v1152_v53 = vld [vmem:[%s1398_s15 + $0x28] sm:$0xff] (!%p1100_p1)   ;;  %v1123_v60 = vunpack.c.h.bf16 (!%p1100_p1), %v1148_v40  ;;  %s550_s3 = sshra.s32 (!%p1100_p1), %s1102_s2, 3 }
   0xd   :  { %96 = vst [vmem:[#allocation3 + $0x40] sm:$0xff] %v1316_v1  ;;  %97 = vst [vmem:[#allocation3 + $0x48] sm:$0xff] %v1316_v1  ;;  %142 = vperm.xlu1 (!%p1100_p1), %1224, %v111_v7   ;;  %137 = vperm.xlu0 (!%p1100_p1), %1223, %v110_v8   ;;  %v1118_v27 = vunpack.c.l.bf16 (!%p1100_p1), %v1117_v22  ;;  %v1151_v28 = vld [vmem:[%s1398_s15 + $0x20] sm:$0xff] (!%p1100_p1)   ;;  %v1119_v35 = vunpack.c.h.bf16 (!%p1100_p1), %v1117_v22  ;;  %v1138_v61 = vunpack.c.l.bf16 (!%p1100_p1), %v1152_v53  ;;  %v1149_v2 = vld [vmem:[%s1398_s15 + $0x10] sm:$0xff] (!%p1100_p1)   ;;  %s1103_s11 = sshll.u32 (!%p1100_p1), %s550_s3, 2 }
   0xe   :  { %98 = vst [vmem:[#allocation3 + $0x50] sm:$0xff] %v1316_v1  ;;  %99 = vst [vmem:[#allocation3 + $0x58] sm:$0xff] %v1316_v1  ;;  %v1134_v34 = vunpack.c.l.bf16 (!%p1100_p1), %v1151_v28  ;;  %v1135_v47 = vunpack.c.h.bf16 (!%p1100_p1), %v1151_v28  ;;  %s1533_s30 = scalar_lea.vmem (!%p1100_p1), %s1851_s4, %s1103_s11 }
   0xf   :  { %100 = vst [vmem:[#allocation3 + $0x60] sm:$0xff] %v1316_v1  ;;  %101 = vst [vmem:[#allocation3 + $0x68] sm:$0xff] %v1316_v1 }
  0x10   :  { %102 = vst [vmem:[#allocation3 + $0x70] sm:$0xff] %v1316_v1  ;;  %103 = vst [vmem:[#allocation3 + $0x78] sm:$0xff] %v1316_v1 }
  0x11   :  { %182 = vperm.xlu1 %1224, %v119_v9   ;;  %177 = vperm.xlu0 %1223, %v118_v10   ;;  %v1139_v9 = vunpack.c.h.bf16 %v1152_v53  ;;  %v1126_v10 = vunpack.c.l.bf16 %v1149_v2 }
  0x15   :  { %152 = vperm.xlu1 %1224, %v113_v11   ;;  %147 = vperm.xlu0 %1223, %v112_v12  }
  0x19   :  { %192 = vperm.xlu1 %1224, %v121_v13   ;;  %187 = vperm.xlu0 %1223, %v120_v14  }
  0x1d   :  { %162 = vperm.xlu1 %1224, %v115_v15   ;;  %157 = vperm.xlu0 %1223, %v114_v16   ;;  %v1153_v15 = vld [vmem:[%s1398_s15 + $0x30] sm:$0xff]  }
  0x21   :  { %202 = vperm.xlu1 %1224, %v123_v17   ;;  %197 = vperm.xlu0 %1223, %v122_v18  }
  0x84   :  { %v168_v20 = vpop.permute.xlu1 %167  ;;  %v128_v21 = vpop.permute.xlu0 %127 }
  0x85   :  { %v219_v23 = vadd.f32 %v1456_v19, %v168_v20  ;;  %v211_v24 = vadd.f32 %v1456_v19, %v128_v21 }
  0x87   :  { %v235_v25 = vmul.f32 0.2, %v219_v23  ;;  %v227_v26 = vmul.f32 0.2, %v211_v24 }
  0x88   :  { %v173_v29 = vpop.permute.xlu1 %172  ;;  %v133_v30 = vpop.permute.xlu0 %132 }
  0x89   :  { %v243_v31 = vmax.f32 %v211_v24, %v227_v26  ;;  %v220_v32 = vadd.f32 %v1456_v19, %v173_v29  ;;  %v212_v33 = vadd.f32 %v1456_v19, %v133_v30  ;;  %v251_v36 = vmax.f32 %v219_v23, %v235_v25  ;;  %v1150_v29 = vld [vmem:[%s1398_s15 + $0x18] sm:$0xff]  }
  0x8a   :  { %v1127_v23 = vunpack.c.h.bf16 %v1149_v2  ;;  %v1142_v24 = vunpack.c.l.bf16 %v1153_v15  ;;  %v1536_v2 = vld [vmem:[#allocation2] sm:$0xff] }
  0x8b   :  { %v236_v37 = vmul.f32 0.2, %v220_v32  ;;  %v228_v38 = vmul.f32 0.2, %v212_v33  ;;  %v1464_v39 = vadd.f32 %v1118_v27, %v243_v31  ;;  %v1470_v51 = vadd.f32 %v1134_v34, %v251_v36 }
  0x8c   :  { %v143_v41 = vpop.permute.xlu1 %142  ;;  %v138_v42 = vpop.permute.xlu0 %137  ;;  %v1143_v36 = vunpack.c.h.bf16 %v1153_v15  ;;  %v1560_v15 = vld [vmem:[#allocation2 + $0x10] sm:$0xff] }
  0x8d   :  { %v244_v43 = vmax.f32 %v212_v33, %v228_v38  ;;  %v214_v44 = vadd.f32 %v1456_v19, %v143_v41  ;;  %v213_v45 = vadd.f32 %v1456_v19, %v138_v42  ;;  %323 = vmax.xlane.f32.xlu0 %v1464_v39  ;;  %v252_v46 = vmax.f32 %v220_v32, %v236_v37 }
  0x8e   :  { %v1130_v37 = vunpack.c.l.bf16 %v1150_v29 }
  0x8f   :  { %v230_v49 = vmul.f32 0.2, %v214_v44  ;;  %v229_v50 = vmul.f32 0.2, %v213_v45  ;;  %v1472_v52 = vadd.f32 %v1119_v35, %v244_v43  ;;  %v1479_v59 = vadd.f32 %v1135_v47, %v252_v46  ;;  %v1154_v43 = vld [vmem:[%s1398_s15 + $0x38] sm:$0xff]  }
  0x90   :  { %v183_v54 = vpop.permute.xlu1 %182  ;;  %v178_v55 = vpop.permute.xlu0 %177  ;;  %v1146_v53 = vunpack.c.l.bf16 %v1154_v43 }
  0x91   :  { %v245_v56 = vmax.f32 %v213_v45, %v229_v50  ;;  %v222_v57 = vadd.f32 %v1456_v19, %v183_v54  ;;  %v221_v58 = vadd.f32 %v1456_v19, %v178_v55  ;;  %339 = vmax.xlane.f32.xlu0 %v1470_v51  ;;  %325 = vmax.xlane.f32.xlu1 %v1472_v52  ;;  %v1131_v50 = vunpack.c.h.bf16 %v1150_v29 }
  0x92   :  { %v246_v62 = vmax.f32 %v214_v44, %v230_v49 }
  0x93   :  { %v238_v63 = vmul.f32 0.2, %v222_v57  ;;  %v237_v0 = vmul.f32 0.2, %v221_v58  ;;  %v1481_v1 = vadd.f32 %v1122_v48, %v245_v56 }
  0x94   :  { %v153_v3 = vpop.permute.xlu1 %152  ;;  %v148_v4 = vpop.permute.xlu0 %147  ;;  %v1488_v13 = vadd.f32 %v1123_v60, %v246_v62  ;;  %v1147_v62 = vunpack.c.h.bf16 %v1154_v43  ;;  %v1611_v43 = vld [vmem:[#allocation2 + $0x60] sm:$0xff] }
  0x95   :  { %v253_v5 = vmax.f32 %v221_v58, %v237_v0  ;;  %v216_v6 = vadd.f32 %v1456_v19, %v153_v3  ;;  %v215_v7 = vadd.f32 %v1456_v19, %v148_v4  ;;  %341 = vmax.xlane.f32.xlu0 %v1479_v59  ;;  %v254_v8 = vmax.f32 %v222_v57, %v238_v63  ;;  %v1225_v0 = vld [vmem:[%s1533_s30] sm:$0xff]  }
  0x96   :  { %327 = vmax.xlane.f32.xlu1 %v1481_v1  ;;  %1171 = vmatprep.subr.bf16.mxu0 %v1225_v0 }
  0x97   :  { %v232_v11 = vmul.f32 0.2, %v216_v6  ;;  %v231_v12 = vmul.f32 0.2, %v215_v7  ;;  %v1490_v14 = vadd.f32 %v1138_v61, %v253_v5  ;;  %v1497_v22 = vadd.f32 %v1139_v9, %v254_v8  ;;  %1203 = vmatprep.subr.bf16.mxu1 %v1225_v0  ;;  %1172 = vmatpush3.bf16.msra.mxu0 %v1225_v0  ;;  %v1541_v5 = vld [vmem:[#allocation2 + $0x40] sm:$0xff] }
  0x98   :  { %v193_v16 = vpop.permute.xlu1 %192  ;;  %v188_v17 = vpop.permute.xlu0 %187  ;;  %1211 = vmatpush3.bf16.msra.mxu1 %v1225_v0  ;;  %v1231_v0 = vld [vmem:[%s1533_s30 + $0x30] sm:$0xff]  }
  0x99   :  { %v247_v18 = vmax.f32 %v215_v7, %v231_v12  ;;  %v224_v20 = vadd.f32 %v1456_v19, %v193_v16  ;;  %v223_v21 = vadd.f32 %v1456_v19, %v188_v17  ;;  %329 = vmax.xlane.f32.xlu0 %v1488_v13  ;;  %v248_v25 = vmax.f32 %v216_v6, %v232_v11  ;;  %v1546_v6 = vld [vmem:[#allocation2 + $0x8] sm:$0xff]  ;;  %v1227_v17 = vld [vmem:[%s1533_s30 + $0x10] sm:$0xff]  }
  0x9a   :  { %343 = vmax.xlane.f32.xlu1 %v1490_v14  ;;  %v1226_v7 = vld [vmem:[%s1533_s30 + $0x8] sm:$0xff]  }
  0x9b   :  { %v240_v26 = vmul.f32 0.2, %v224_v20  ;;  %v239_v27 = vmul.f32 0.2, %v223_v21  ;;  %v1499_v28 = vadd.f32 %v1126_v10, %v247_v18  ;;  %v1506_v41 = vadd.f32 %v1127_v23, %v248_v25  ;;  %1173 = vmatprep.subr.bf16.mxu0 %v1226_v7  ;;  %1204 = vmatprep.subr.bf16.mxu1 %v1226_v7  ;;  %v1555_v12 = vld [vmem:[#allocation2 + $0x48] sm:$0xff]  ;;  %v1572_v23 = vld [vmem:[#allocation2 + $0x18] sm:$0xff] }
  0x9c   :  { %v163_v30 = vpop.permute.xlu1 %162  ;;  %v158_v31 = vpop.permute.xlu0 %157  ;;  %1174 = vmatpush3.bf16.msra.mxu0 %v1226_v7  ;;  %1212 = vmatpush3.bf16.msra.mxu1 %v1226_v7 }
  0x9d   :  { %v255_v32 = vmax.f32 %v223_v21, %v239_v27  ;;  %v218_v33 = vadd.f32 %v1456_v19, %v163_v30  ;;  %v217_v34 = vadd.f32 %v1456_v19, %v158_v31  ;;  %345 = vmax.xlane.f32.xlu0 %v1497_v22  ;;  %v256_v35 = vmax.f32 %v224_v20, %v240_v26  ;;  %v1228_v26 = vld [vmem:[%s1533_s30 + $0x18] sm:$0xff]  }
  0x9e   :  { %331 = vmax.xlane.f32.xlu1 %v1499_v28  ;;  %1175 = vmatprep.subr.bf16.mxu0 %v1227_v17  ;;  %v1589_v31 = vld [vmem:[#allocation2 + $0x58] sm:$0xff] }
  0x9f   :  { %v234_v38 = vmul.f32 0.2, %v218_v33  ;;  %v233_v40 = vmul.f32 0.2, %v217_v34  ;;  %v1508_v42 = vadd.f32 %v1142_v24, %v255_v32  ;;  %v1515_v49 = vadd.f32 %v1143_v36, %v256_v35  ;;  %1205 = vmatprep.subr.bf16.mxu1 %v1227_v17  ;;  %v1577_v24 = vld [vmem:[#allocation2 + $0x50] sm:$0xff]  ;;  %v1594_v32 = vld [vmem:[#allocation2 + $0x20] sm:$0xff] }
  0xa0   :  { %v203_v44 = vpop.permute.xlu1 %202  ;;  %v198_v45 = vpop.permute.xlu0 %197  ;;  %1176 = vmatpush3.bf16.msra.mxu0 %v1227_v17  ;;  %1213 = vmatpush3.bf16.msra.mxu1 %v1227_v17  ;;  %v1232_v17 = vld [vmem:[%s1533_s30 + $0x38] sm:$0xff]  }
  0xa1   :  { %v249_v46 = vmax.f32 %v217_v34, %v233_v40  ;;  %v226_v47 = vadd.f32 %v1456_v19, %v203_v44  ;;  %v225_v48 = vadd.f32 %v1456_v19, %v198_v45  ;;  %333 = vmax.xlane.f32.xlu0 %v1506_v41  ;;  %v250_v54 = vmax.f32 %v218_v33, %v234_v38  ;;  %v1229_v34 = vld [vmem:[%s1533_s30 + $0x20] sm:$0xff]   ;;  %v1606_v40 = vld [vmem:[#allocation2 + $0x28] sm:$0xff] }
  0xa2   :  { %347 = vmax.xlane.f32.xlu1 %v1508_v42  ;;  %1177 = vmatprep.subr.bf16.mxu0 %v1228_v26 }
  0xa3   :  { %v242_v55 = vmul.f32 0.2, %v226_v47  ;;  %v241_v56 = vmul.f32 0.2, %v225_v48  ;;  %v1517_v57 = vadd.f32 %v1130_v37, %v249_v46  ;;  %v1521_v19 = vadd.f32 %v1131_v50, %v250_v54  ;;  %1206 = vmatprep.subr.bf16.mxu1 %v1228_v26  ;;  %v1230_v46 = vld [vmem:[%s1533_s30 + $0x28] sm:$0xff]  }
  0xa4   :  { %1178 = vmatpush3.bf16.msra.mxu0 %v1228_v26  ;;  %1214 = vmatpush3.bf16.msra.mxu1 %v1228_v26 }
  0xa5   :  { %v257_v58 = vmax.f32 %v225_v48, %v241_v56  ;;  %349 = vmax.xlane.f32.xlu0 %v1515_v49  ;;  %v258_v60 = vmax.f32 %v226_v47, %v242_v55  ;;  %1179 = vmatprep.subr.bf16.mxu0 %v1229_v34  ;;  %v1623_v55 = vld [vmem:[#allocation2 + $0x68] sm:$0xff]  ;;  %v313_v56 = vld [vmem:[#allocation2 + $0x30] sm:$0xff] }
  0xa6   :  { %335 = vmax.xlane.f32.xlu1 %v1517_v57  ;;  %1207 = vmatprep.subr.bf16.mxu1 %v1229_v34 }
  0xa7   :  { %v1523_v61 = vadd.f32 %v1146_v53, %v257_v58  ;;  %v1527_v63 = vadd.f32 %v1147_v62, %v258_v60 }
  0xa8   :  { %1180 = vmatpush3.bf16.msra.mxu0 %v1229_v34  ;;  %1215 = vmatpush3.bf16.msra.mxu1 %v1229_v34 }
  0xa9   :  { %337 = vmax.xlane.f32.xlu0 %v1521_v19  ;;  %1181 = vmatprep.subr.bf16.mxu0 %v1230_v46 }
  0xaa   :  { %351 = vmax.xlane.f32.xlu1 %v1523_v61  ;;  %1208 = vmatprep.subr.bf16.mxu1 %v1230_v46 }
  0xac   :  { %1182 = vmatpush3.bf16.msra.mxu0 %v1230_v46  ;;  %1216 = vmatpush3.bf16.msra.mxu1 %v1230_v46 }
  0xad   :  { %353 = vmax.xlane.f32.xlu0 %v1527_v63  ;;  %1183 = vmatprep.subr.bf16.mxu0 %v1231_v0 }
  0xae   :  { %1209 = vmatprep.subr.bf16.mxu1 %v1231_v0 }
  0xb0   :  { %1184 = vmatpush3.bf16.msra.mxu0 %v1231_v0  ;;  %1217 = vmatpush3.bf16.msra.mxu1 %v1231_v0 }
  0xb1   :  { %1185 = vmatprep.subr.bf16.mxu0 %v1232_v17  ;;  %1210 = vmatprep.subr.bf16.mxu1 %v1232_v17 }
  0xb4   :  { %1186 = vmatpush3.bf16.msra.mxu0 %v1232_v17  ;;  %1218 = vmatpush3.bf16.msra.mxu1 %v1232_v17 }
 0x11a   :  { %v324_v3 = vpop.xlane.xlu0 %323 }
 0x11b   :  { %v1539_v4 = vmax.f32 %v1536_v2, %v324_v3 }
 0x11d   :  { %860 = vst.msk [vmem:[#allocation2] sm:$0xff] %vm71_vm0, %v1539_v4  ;;  %421 = vperm.xlu1 %1224, %v1539_v4   ;;  %v371_v35 = vsub.f32 %v1536_v2, %v1539_v4 }
 0x11e   :  { %v340_v8 = vpop.xlane.xlu0 %339  ;;  %v326_v9 = vpop.xlane.xlu1 %325 }
 0x11f   :  { %v1550_v10 = vmax.f32 %v1541_v5, %v340_v8  ;;  %v1553_v11 = vmax.f32 %v1546_v6, %v326_v9  ;;  %v387_v47 = vmul.f32 1.442695, %v371_v35  ;;  %v314_v8 = vld [vmem:[#allocation2 + $0x38] sm:$0xff]  ;;  %v1639_v9 = vld [vmem:[#allocation2 + $0x70] sm:$0xff] }
 0x121   :  { %868 = vst.msk [vmem:[#allocation2 + $0x40] sm:$0xff] %vm71_vm0, %v1550_v10  ;;  %461 = vperm.xlu1 %1224, %v1550_v10   ;;  %861 = vst.msk [vmem:[#allocation2 + $0x8] sm:$0xff] %vm71_vm0, %v1553_v11  ;;  %426 = vperm.xlu0 %1223, %v1553_v11   ;;  %v372_v44 = vsub.f32 %v1546_v6, %v1553_v11  ;;  %1233 = vpow2.f32 %v387_v47  ;;  %v379_v34 = vsub.f32 %v1541_v5, %v1550_v10 }
 0x122   :  { %v342_v16 = vpop.xlane.xlu0 %341 }
 0x123   :  { %v328_v18 = vpop.xlane.xlu1 %327  ;;  %v1567_v20 = vmax.f32 %v1555_v12, %v342_v16  ;;  %v389_v58 = vmul.f32 1.442695, %v372_v44 }
 0x124   :  { %v1570_v21 = vmax.f32 %v1560_v15, %v328_v18 }
 0x125   :  { %869 = vst.msk [vmem:[#allocation2 + $0x48] sm:$0xff] %vm71_vm0, %v1567_v20  ;;  %466 = vperm.xlu1 %1224, %v1567_v20   ;;  %1235 = vpow2.f32 %v389_v58 }
 0x126   :  { %862 = vst.msk [vmem:[#allocation2 + $0x10] sm:$0xff] %vm71_vm0, %v1570_v21  ;;  %431 = vperm.xlu0 %1223, %v1570_v21   ;;  %v330_v25 = vpop.xlane.xlu0 %329  ;;  %v373_v48 = vsub.f32 %v1560_v15, %v1570_v21 }
 0x127   :  { %v344_v27 = vpop.xlane.xlu1 %343  ;;  %v1584_v29 = vmax.f32 %v1572_v23, %v330_v25 }
 0x128   :  { %v1587_v30 = vmax.f32 %v1577_v24, %v344_v27  ;;  %v391_v2 = vmul.f32 1.442695, %v373_v48  ;;  %v322_v27 = vld [vmem:[#allocation2 + $0x78] sm:$0xff] }
 0x129   :  { %863 = vst.msk [vmem:[#allocation2 + $0x18] sm:$0xff] %vm71_vm0, %v1584_v29  ;;  %436 = vperm.xlu1 %1224, %v1584_v29   ;;  %v374_v60 = vsub.f32 %v1572_v23, %v1584_v29 }
 0x12a   :  { %870 = vst.msk [vmem:[#allocation2 + $0x50] sm:$0xff] %vm71_vm0, %v1587_v30  ;;  %471 = vperm.xlu0 %1223, %v1587_v30   ;;  %v346_v33 = vpop.xlane.xlu0 %345  ;;  %1237 = vpow2.f32 %v391_v2  ;;  %v381_v46 = vsub.f32 %v1577_v24, %v1587_v30 }
 0x12b   :  { %v332_v36 = vpop.xlane.xlu1 %331  ;;  %v1603_v37 = vmax.f32 %v1589_v31, %v346_v33  ;;  %v393_v11 = vmul.f32 1.442695, %v374_v60 }
 0x12c   :  { %v359_v38 = vmax.f32 %v1594_v32, %v332_v36 }
 0x12d   :  { %871 = vst.msk [vmem:[#allocation2 + $0x58] sm:$0xff] %vm71_vm0, %v1603_v37  ;;  %476 = vperm.xlu1 %1224, %v1603_v37   ;;  %1239 = vpow2.f32 %v393_v11  ;;  %v382_v48 = vsub.f32 %v1589_v31, %v1603_v37 }
 0x12e   :  { %864 = vst.msk [vmem:[#allocation2 + $0x20] sm:$0xff] %vm71_vm0, %v359_v38  ;;  %441 = vperm.xlu0 %1223, %v359_v38   ;;  %v334_v45 = vpop.xlane.xlu0 %333  ;;  %v375_v3 = vsub.f32 %v1594_v32, %v359_v38  ;;  %v1234_v38 = vpop.eup %1233 }
 0x12f   :  { %v348_v50 = vpop.xlane.xlu1 %347  ;;  %v360_v53 = vmax.f32 %v1606_v40, %v334_v45  ;;  %v403_v45 = vmul.f32 1.442695, %v379_v34  ;;  %v1236_v47 = vpop.eup %1235  ;;  %v409_v24 = vmul.f32 1.442695, %v382_v48 }
 0x130   :  { %v1621_v54 = vmax.f32 %v1611_v43, %v348_v50  ;;  %v395_v18 = vmul.f32 1.442695, %v375_v3  ;;  %v407_v50 = vmul.f32 1.442695, %v381_v46 }
 0x131   :  { %865 = vst.msk [vmem:[#allocation2 + $0x28] sm:$0xff] %vm71_vm0, %v360_v53  ;;  %446 = vperm.xlu1 %1224, %v360_v53   ;;  %v376_v15 = vsub.f32 %v1606_v40, %v360_v53  ;;  %v380_v40 = vsub.f32 %v1555_v12, %v1567_v20 }
 0x132   :  { %872 = vst.msk [vmem:[#allocation2 + $0x60] sm:$0xff] %vm71_vm0, %v1621_v54  ;;  %481 = vperm.xlu0 %1223, %v1621_v54   ;;  %v350_v62 = vpop.xlane.xlu0 %349  ;;  %1241 = vpow2.f32 %v395_v18  ;;  %v383_v12 = vsub.f32 %v1611_v43, %v1621_v54 }
 0x133   :  { %v336_v4 = vpop.xlane.xlu1 %335  ;;  %v1634_v6 = vmax.f32 %v1623_v55, %v350_v62  ;;  %v397_v29 = vmul.f32 1.442695, %v376_v15  ;;  %v405_v10 = vmul.f32 1.442695, %v380_v40 }
 0x134   :  { %v361_v7 = vmax.f32 %v313_v56, %v336_v4  ;;  %v1238_v5 = vpop.eup %1237 }
 0x135   :  { %873 = vst.msk [vmem:[#allocation2 + $0x68] sm:$0xff] %vm71_vm0, %v1634_v6  ;;  %486 = vperm.xlu1 %1224, %v1634_v6   ;;  %1243 = vpow2.f32 %v397_v29  ;;  %v384_v30 = vsub.f32 %v1623_v55, %v1634_v6 }
 0x136   :  { %866 = vst.msk [vmem:[#allocation2 + $0x30] sm:$0xff] %vm71_vm0, %v361_v7  ;;  %451 = vperm.xlu0 %1223, %v361_v7   ;;  %v338_v16 = vpop.xlane.xlu0 %337  ;;  %v377_v21 = vsub.f32 %v313_v56, %v361_v7  ;;  %v411_v56 = vmul.f32 1.442695, %v383_v12 }
 0x137   :  { %v352_v23 = vpop.xlane.xlu1 %351  ;;  %v362_v25 = vmax.f32 %v314_v8, %v338_v16  ;;  %v1240_v20 = vpop.eup %1239  ;;  %v413_v60 = vmul.f32 1.442695, %v384_v30 }
 0x138   :  { %v369_v26 = vmax.f32 %v1639_v9, %v352_v23  ;;  %v399_v35 = vmul.f32 1.442695, %v377_v21 }
 0x139   :  { %867 = vst.msk [vmem:[#allocation2 + $0x38] sm:$0xff] %vm71_vm0, %v362_v25  ;;  %456 = vperm.xlu1 %1224, %v362_v25   ;;  %v378_v32 = vsub.f32 %v314_v8, %v362_v25 }
 0x13a   :  { %874 = vst.msk [vmem:[#allocation2 + $0x70] sm:$0xff] %vm71_vm0, %v369_v26  ;;  %491 = vperm.xlu0 %1223, %v369_v26   ;;  %v354_v33 = vpop.xlane.xlu0 %353  ;;  %1245 = vpow2.f32 %v399_v35  ;;  %v385_v31 = vsub.f32 %v1639_v9, %v369_v26 }
 0x13b   :  { %v370_v36 = vmax.f32 %v322_v27, %v354_v33  ;;  %v401_v44 = vmul.f32 1.442695, %v378_v32 }
 0x13c   :  { %v1242_v53 = vpop.eup %1241  ;;  %v415_v43 = vmul.f32 1.442695, %v385_v31 }
 0x13d   :  { %875 = vst.msk [vmem:[#allocation2 + $0x78] sm:$0xff] %vm71_vm0, %v370_v36  ;;  %496 = vperm.xlu1 %1224, %v370_v36   ;;  %1247 = vpow2.f32 %v401_v44  ;;  %v386_v62 = vsub.f32 %v322_v27, %v370_v36 }
 0x13e   :  { %588 = vperm.xlu0 %1223, %v1234_v38   ;;  %1249 = vpow2.f32 %v403_v45 }
 0x13f   :  { %1251 = vpow2.f32 %v405_v10  ;;  %v1244_v37 = vpop.eup %1243  ;;  %v417_v2 = vmul.f32 1.442695, %v386_v62 }
 0x140   :  { %1253 = vpow2.f32 %v407_v50 }
 0x141   :  { %593 = vperm.xlu1 %1224, %v1236_v47   ;;  %1255 = vpow2.f32 %v409_v24 }
 0x142   :  { %598 = vperm.xlu0 %1223, %v1238_v5   ;;  %1257 = vpow2.f32 %v411_v56 }
 0x143   :  { %1259 = vpow2.f32 %v413_v60 }
 0x144   :  { %v1246_v58 = vpop.eup %1245  ;;  %1261 = vpow2.f32 %v415_v43 }
 0x145   :  { %603 = vperm.xlu1 %1224, %v1240_v20   ;;  %1263 = vpow2.f32 %v417_v2 }
 0x146   :  { %608 = vperm.xlu0 %1223, %v1242_v53  }
 0x147   :  { %v1248_v54 = vpop.eup %1247 }
 0x148   :  { %v1250_v0 = vpop.eup %1249 }
 0x149   :  { %613 = vperm.xlu1 %1224, %v1244_v37   ;;  %v1252_v55 = vpop.eup %1251 }
 0x14a   :  { %618 = vperm.xlu0 %1223, %v1246_v58   ;;  %v1254_v3 = vpop.eup %1253 }
 0x14b   :  { %v1256_v4 = vpop.eup %1255 }
 0x14c   :  { %v1258_v6 = vpop.eup %1257 }
 0x14d   :  { %623 = vperm.xlu1 %1224, %v1248_v54   ;;  %v1260_v7 = vpop.eup %1259 }
 0x14e   :  { %628 = vperm.xlu0 %1223, %v1250_v0   ;;  %v1262_v8 = vpop.eup %1261 }
 0x14f   :  { %v1264_v9 = vpop.eup %1263 }
 0x151   :  { %633 = vperm.xlu1 %1224, %v1252_v55  }
 0x152   :  { %638 = vperm.xlu0 %1223, %v1254_v3  }
 0x155   :  { %643 = vperm.xlu1 %1224, %v1256_v4  }
 0x156   :  { %648 = vperm.xlu0 %1223, %v1258_v6  }
 0x159   :  { %653 = vperm.xlu1 %1224, %v1260_v7  }
 0x15a   :  { %658 = vperm.xlu0 %1223, %v1262_v8  }
 0x15d   :  { %663 = vperm.xlu1 %1224, %v1264_v9  }
 0x19c   :  { %v422_v11 = vpop.permute.xlu1 %421 }
 0x19d   :  { %v499_v17 = vsub.f32 %v1464_v39, %v422_v11 }
 0x1a0   :  { %v462_v15 = vpop.permute.xlu1 %461  ;;  %v427_v16 = vpop.permute.xlu0 %426 }
 0x1a1   :  { %v500_v18 = vsub.f32 %v1472_v52, %v427_v16  ;;  %v507_v25 = vsub.f32 %v1470_v51, %v462_v15  ;;  %v572_v15 = vld [vmem:[#allocation3 + $0x10] sm:$0xff] }
 0x1a3   :  { %v515_v21 = vpack.c.bf16 %v500_v18, %v499_v17  ;;  %v570_v17 = vld [vmem:[#allocation3] sm:$0xff]  ;;  %v573_v18 = vld [vmem:[#allocation3 + $0x18] sm:$0xff] }
 0x1a4   :  { %v467_v23 = vpop.permute.xlu1 %466 }
 0x1a5   :  { %v508_v26 = vsub.f32 %v1479_v59, %v467_v23  ;;  %v432_v27 = vpop.permute.xlu0 %431  ;;  %v524_v29 = vmul.bf16 1069105081, %v515_v21  ;;  %v571_v21 = vld [vmem:[#allocation3 + $0x8] sm:$0xff] }
 0x1a6   :  { %v501_v34 = vsub.f32 %v1481_v1, %v432_v27 }
 0x1a7   :  { %v519_v32 = vpack.c.bf16 %v508_v26, %v507_v25  ;;  %1265 = vpow.bf16 %v524_v29  ;;  %v580_v26 = vld [vmem:[#allocation3 + $0x50] sm:$0xff] }
 0x1a8   :  { %v437_v33 = vpop.permute.xlu1 %436 }
 0x1a9   :  { %v502_v35 = vsub.f32 %v1488_v13, %v437_v33  ;;  %v472_v36 = vpop.permute.xlu0 %471  ;;  %v536_v38 = vmul.bf16 1069105081, %v519_v32  ;;  %v578_v33 = vld [vmem:[#allocation3 + $0x40] sm:$0xff] }
 0x1aa   :  { %v509_v44 = vsub.f32 %v1490_v14, %v472_v36 }
 0x1ab   :  { %v516_v39 = vpack.c.bf16 %v502_v35, %v501_v34  ;;  %1267 = vpow.bf16 %v536_v38  ;;  %v581_v38 = vld [vmem:[#allocation3 + $0x58] sm:$0xff] }
 0x1ac   :  { %v477_v52 = vpop.permute.xlu1 %476 }
 0x1ad   :  { %v527_v40 = vmul.bf16 1069105081, %v516_v39  ;;  %v510_v51 = vsub.f32 %v1497_v22, %v477_v52  ;;  %v442_v59 = vpop.permute.xlu0 %441 }
 0x1ae   :  { %v503_v5 = vsub.f32 %v1499_v28, %v442_v59 }
 0x1af   :  { %1269 = vpow.bf16 %v527_v40  ;;  %v520_v45 = vpack.c.bf16 %v510_v51, %v509_v44  ;;  %v579_v44 = vld [vmem:[#allocation3 + $0x48] sm:$0xff] }
 0x1b0   :  { %v447_v46 = vpop.permute.xlu1 %446 }
 0x1b1   :  { %v539_v47 = vmul.bf16 1069105081, %v520_v45  ;;  %v504_v1 = vsub.f32 %v1506_v41, %v447_v46  ;;  %v482_v13 = vpop.permute.xlu0 %481 }
 0x1b2   :  { %v1266_v10 = vpop.eup %1265  ;;  %v511_v14 = vsub.f32 %v1508_v42, %v482_v13 }
 0x1b3   :  { %1271 = vpow.bf16 %v539_v47  ;;  %v517_v48 = vpack.c.bf16 %v504_v1, %v503_v5  ;;  %1187 = vmatprep.mubr.bf16.mxu0 %v1266_v10 }
 0x1b4   :  { %v487_v50 = vpop.permute.xlu1 %486 }
 0x1b5   :  { %v530_v12 = vmul.bf16 1069105081, %v517_v48  ;;  %v512_v22 = vsub.f32 %v1515_v49, %v487_v50  ;;  %v452_v20 = vpop.permute.xlu0 %451 }
 0x1b6   :  { %v1268_v53 = vpop.eup %1267  ;;  %v505_v41 = vsub.f32 %v1517_v57, %v452_v20 }
 0x1b7   :  { %1273 = vpow.bf16 %v530_v12  ;;  %v521_v24 = vpack.c.bf16 %v512_v22, %v511_v14  ;;  %1195 = vmatprep.mubr.bf16.mxu1 %v1268_v53 }
 0x1b8   :  { %v457_v30 = vpop.permute.xlu1 %456 }
 0x1b9   :  { %v542_v28 = vmul.bf16 1069105081, %v521_v24  ;;  %v506_v56 = vsub.f32 %v1521_v19, %v457_v30  ;;  %v492_v37 = vpop.permute.xlu0 %491  ;;  %v576_v24 = vld [vmem:[#allocation3 + $0x30] sm:$0xff] }
 0x1ba   :  { %v1270_v31 = vpop.eup %1269  ;;  %v513_v49 = vsub.f32 %v1523_v61, %v492_v37 }
 0x1bb   :  { %1275 = vpow.bf16 %v542_v28  ;;  %v518_v58 = vpack.c.bf16 %v506_v56, %v505_v41  ;;  %1188 = vmatmul.mubr.bf16.vlgmr.msra.gmra.mrb[0].mxu0 %v1270_v31  ;;  %v574_v28 = vld [vmem:[#allocation3 + $0x20] sm:$0xff]  ;;  %v577_v41 = vld [vmem:[#allocation3 + $0x38] sm:$0xff]  ;;  %v575_v56 = vld [vmem:[#allocation3 + $0x28] sm:$0xff] }
 0x1bc   :  { %v497_v60 = vpop.permute.xlu1 %496 }
 0x1bd   :  { %v533_v42 = vmul.bf16 1069105081, %v518_v58  ;;  %v514_v62 = vsub.f32 %v1527_v63, %v497_v60  ;;  %v589_v3 = vpop.permute.xlu0 %588  ;;  %v584_v58 = vld [vmem:[#allocation3 + $0x70] sm:$0xff] }
 0x1be   :  { %v1272_v43 = vpop.eup %1271  ;;  %v666_v25 = vmul.f32 %v589_v3, %v570_v17  ;;  %v583_v3 = vld [vmem:[#allocation3 + $0x68] sm:$0xff] }
 0x1bf   :  { %1277 = vpow.bf16 %v533_v42  ;;  %v522_v54 = vpack.c.bf16 %v514_v62, %v513_v49  ;;  %1196 = vmatmul.mubr.bf16.vlgmr.msra.gmra.mrb[0].mxu1 %v1272_v43  ;;  %v582_v62 = vld [vmem:[#allocation3 + $0x60] sm:$0xff] }
 0x1c0   :  { %v594_v4 = vpop.permute.xlu1 %593 }
 0x1c1   :  { %v545_v0 = vmul.bf16 1069105081, %v522_v54  ;;  %v599_v6 = vpop.permute.xlu0 %598  ;;  %v667_v36 = vmul.f32 %v594_v4, %v571_v21 }
 0x1c2   :  { %v1274_v2 = vpop.eup %1273  ;;  %v668_v23 = vmul.f32 %v599_v6, %v572_v15 }
 0x1c3   :  { %1279 = vpow.bf16 %v545_v0  ;;  %1191 = vmatprep.mubr.bf16.mxu0 %v1274_v2  ;;  %v585_v2 = vld [vmem:[#allocation3 + $0x78] sm:$0xff] }
 0x1c4   :  { %v604_v61 = vpop.permute.xlu1 %603 }
 0x1c5   :  { %v609_v7 = vpop.permute.xlu0 %608  ;;  %v669_v32 = vmul.f32 %v604_v61, %v573_v18 }
 0x1c6   :  { %v1276_v57 = vpop.eup %1275  ;;  %v670_v37 = vmul.f32 %v609_v7, %v574_v28 }
 0x1c7   :  { %1199 = vmatprep.mubr.bf16.mxu1 %v1276_v57 }
 0x1c8   :  { %v614_v63 = vpop.permute.xlu1 %613 }
 0x1c9   :  { %v619_v8 = vpop.permute.xlu0 %618  ;;  %v671_v0 = vmul.f32 %v614_v63, %v575_v56 }
 0x1ca   :  { %v1278_v19 = vpop.eup %1277  ;;  %v672_v31 = vmul.f32 %v619_v8, %v576_v24 }
 0x1cb   :  { %1192 = vmatmul.mubr.bf16.gmra.mrb[4].mxu0 %v1278_v19 }
 0x1cc   :  { %v624_v9 = vpop.permute.xlu1 %623 }
 0x1cd   :  { %v629_v11 = vpop.permute.xlu0 %628  ;;  %v673_v49 = vmul.f32 %v624_v9, %v577_v41 }
 0x1ce   :  { %v1280_v55 = vpop.eup %1279  ;;  %v674_v46 = vmul.f32 %v629_v11, %v578_v33 }
 0x1cf   :  { %1200 = vmatmul.mubr.bf16.gmra.mrb[4].mxu1 %v1280_v55 }
 0x1d0   :  { %v634_v16 = vpop.permute.xlu1 %633 }
 0x1d1   :  { %v639_v27 = vpop.permute.xlu0 %638  ;;  %v675_v48 = vmul.f32 %v634_v16, %v579_v44 }
 0x1d2   :  { %v676_v51 = vmul.f32 %v639_v27, %v580_v26 }
 0x1d4   :  { %v644_v39 = vpop.permute.xlu1 %643 }
 0x1d5   :  { %v677_v1 = vmul.f32 %v644_v39, %v581_v38  ;;  %v649_v53 = vpop.permute.xlu0 %648 }
 0x1d6   :  { %v678_v11 = vmul.f32 %v649_v53, %v582_v62 }
 0x1d8   :  { %v654_v30 = vpop.permute.xlu1 %653 }
 0x1d9   :  { %v659_v60 = vpop.permute.xlu0 %658  ;;  %v679_v17 = vmul.f32 %v654_v30, %v583_v3 }
 0x1da   :  { %v680_v4 = vmul.f32 %v659_v60, %v584_v58 }
 0x1dc   :  { %v664_v57 = vpop.permute.xlu1 %663 }
 0x1dd   :  { %v681_v15 = vmul.f32 %v664_v57, %v585_v2 }
 0x28e   :  { %v1189_v29 = vpop.f32.mrb[0].mxu0 }
 0x28f   :  { %v829_v34 = vadd.f32 %v1189_v29, %v668_v23  ;;  %v764_v35 = vpop.f32.mrb[1].mxu0 }
 0x290   :  { %v827_v52 = vadd.f32 %v764_v35, %v666_v25  ;;  %v1190_v40 = vpop.f32.mrb[2].mxu0 }
 0x291   :  { %845 = vst [vmem:[#allocation3 + $0x10] sm:$0xff] %v829_v34  ;;  %v830_v59 = vadd.f32 %v1190_v40, %v669_v32  ;;  %v767_v45 = vpop.f32.mrb[3].mxu0 }
 0x292   :  { %843 = vst [vmem:[#allocation3] sm:$0xff] %v827_v52  ;;  %v828_v47 = vadd.f32 %v767_v45, %v667_v36  ;;  %v1197_v5 = vpop.f32.mrb[0].mxu1 }
 0x293   :  { %846 = vst [vmem:[#allocation3 + $0x18] sm:$0xff] %v830_v59  ;;  %v837_v13 = vadd.f32 %v1197_v5, %v676_v51  ;;  %v796_v10 = vpop.f32.mrb[1].mxu1 }
 0x294   :  { %844 = vst [vmem:[#allocation3 + $0x8] sm:$0xff] %v828_v47  ;;  %v835_v50 = vadd.f32 %v796_v10, %v674_v46  ;;  %v1198_v12 = vpop.f32.mrb[2].mxu1 }
 0x295   :  { %853 = vst [vmem:[#allocation3 + $0x50] sm:$0xff] %v837_v13  ;;  %v838_v14 = vadd.f32 %v1198_v12, %v677_v1  ;;  %v799_v22 = vpop.f32.mrb[3].mxu1 }
 0x296   :  { %851 = vst [vmem:[#allocation3 + $0x40] sm:$0xff] %v835_v50  ;;  %v836_v20 = vadd.f32 %v799_v22, %v675_v48 }
 0x297   :  { %854 = vst [vmem:[#allocation3 + $0x58] sm:$0xff] %v838_v14 }
 0x298   :  { %852 = vst [vmem:[#allocation3 + $0x48] sm:$0xff] %v836_v20 }
 0x29e   :  { %v1193_v42 = vpop.f32.mrb[4].mxu0 }
 0x29f   :  { %v833_v43 = vadd.f32 %v1193_v42, %v672_v31  ;;  %v780_v54 = vpop.f32.mrb[5].mxu0 }
 0x2a0   :  { %v831_v19 = vadd.f32 %v780_v54, %v670_v37  ;;  %v1194_v55 = vpop.f32.mrb[6].mxu0 }
 0x2a1   :  { %849 = vst [vmem:[#allocation3 + $0x30] sm:$0xff] %v833_v43  ;;  %v834_v6 = vadd.f32 %v1194_v55, %v673_v49  ;;  %v783_v61 = vpop.f32.mrb[7].mxu0 }
 0x2a2   :  { %847 = vst [vmem:[#allocation3 + $0x20] sm:$0xff] %v831_v19  ;;  %v832_v7 = vadd.f32 %v783_v61, %v671_v0  ;;  %v1201_v8 = vpop.f32.mrb[4].mxu1 }
 0x2a3   :  { %850 = vst [vmem:[#allocation3 + $0x38] sm:$0xff] %v834_v6  ;;  %v841_v9 = vadd.f32 %v1201_v8, %v680_v4  ;;  %v812_v16 = vpop.f32.mrb[5].mxu1 }
 0x2a4   :  { %848 = vst [vmem:[#allocation3 + $0x28] sm:$0xff] %v832_v7  ;;  %v839_v63 = vadd.f32 %v812_v16, %v678_v11  ;;  %v1202_v18 = vpop.f32.mrb[6].mxu1 }
 0x2a5   :  { %857 = vst [vmem:[#allocation3 + $0x70] sm:$0xff] %v841_v9  ;;  %v842_v21 = vadd.f32 %v1202_v18, %v681_v15  ;;  %v815_v23 = vpop.f32.mrb[7].mxu1 }
 0x2a6   :  { %855 = vst [vmem:[#allocation3 + $0x60] sm:$0xff] %v839_v63  ;;  %v840_v25 = vadd.f32 %v815_v23, %v679_v17 }
 0x2a7   :  { %858 = vst [vmem:[#allocation3 + $0x78] sm:$0xff] %v842_v21 }
 0x2a8   :  { %856 = vst [vmem:[#allocation3 + $0x68] sm:$0xff] %v840_v25 }
 0x2a9 PF:  { %s1112_s9 = sadd.s32 4294967295, %s1849_s1 }
 0x2aa   :  { %p1114_p2 = scmp.ne.s32.totalorder %s1112_s9, 0 }
 0x2ab   :  { %v1680_v26 = vld [vmem:[#allocation3 + $0x10] sm:$0xff] (!%p1114_p2)  ;;  %v1682_v27 = vld [vmem:[#allocation3] sm:$0xff] (!%p1114_p2)  ;;  %v1684_v29 = vld [vmem:[#allocation3 + $0x18] sm:$0xff] (!%p1114_p2)  ;;  %v1318_v32 = vmov (!%p1114_p2), 32   ;;  %v1009_v56 = vlaneseq (!%p1114_p2) }
 0x2ac   :  { %880 = sbr.rel (%p1114_p2) target bundleno = 860 (0x35c), region = 33  ;;  %1282 = vset.pattern.permute.xlu1 (!%p1114_p2), %v1318_v32  ;;  %1281 = vset.pattern.permute.xlu0 (!%p1114_p2), %v1318_v32  ;;  %1283 = vrcp.f32 (!%p1114_p2), %v1680_v26  ;;  %v1687_v33 = vld [vmem:[#allocation3 + $0x8] sm:$0xff] (!%p1114_p2)  ;;  %v1694_v35 = vld [vmem:[#allocation3 + $0x20] sm:$0xff] (!%p1114_p2)  ;;  %v1698_v36 = vld [vmem:[#allocation3 + $0x38] sm:$0xff] (!%p1114_p2) }
 0x2ad   :  { %1285 = vrcp.f32 (!%p1114_p2), %v1682_v27  ;;  %v1692_v34 = vld [vmem:[#allocation3 + $0x28] sm:$0xff] (!%p1114_p2)  ;;  %v1700_v38 = vld [vmem:[#allocation3 + $0x30] sm:$0xff] (!%p1114_p2)  ;;  %v1706_v51 = vld [vmem:[#allocation3 + $0x40] sm:$0xff] (!%p1114_p2)  ;;  %v1728_v31 = vand.u32 (!%p1114_p2), 127, %v1009_v56 }
 0x2ae   :  { %1287 = vrcp.f32 (!%p1114_p2), %v1684_v29  ;;  %v1704_v40 = vld [vmem:[#allocation3 + $0x48] sm:$0xff] (!%p1114_p2)  ;;  %v1710_v45 = vld [vmem:[#allocation3 + $0x58] sm:$0xff] (!%p1114_p2)  ;;  %v1712_v47 = vld [vmem:[#allocation3 + $0x50] sm:$0xff] (!%p1114_p2) }
 0x2af   :  { %1289 = vrcp.f32 (!%p1114_p2), %v1687_v33  ;;  %v1716_v1 = vld [vmem:[#allocation3 + $0x68] sm:$0xff] (!%p1114_p2)  ;;  %v1718_v10 = vld [vmem:[#allocation3 + $0x60] sm:$0xff] (!%p1114_p2)  ;;  %v1722_v50 = vld [vmem:[#allocation3 + $0x78] sm:$0xff] (!%p1114_p2)  ;;  %vm1011_vm1 = vcmp.eq.s32.totalorder (!%p1114_p2), %v1728_v31, 32 }
 0x2b0   :  { %1291 = vrcp.f32 (!%p1114_p2), %v1692_v34  ;;  %v1724_v14 = vld [vmem:[#allocation3 + $0x70] sm:$0xff] (!%p1114_p2)  ;;  %v1734_v58 = vld [vmem:[%s1852_s5] ss:$0 sm:$0xff] (!%p1114_p2) }
 0x2b1   :  { %1293 = vrcp.f32 (!%p1114_p2), %v1694_v35 }
 0x2b2   :  { %1295 = vrcp.f32 (!%p1114_p2), %v1698_v36 }
 0x2b3   :  { %1297 = vrcp.f32 %v1700_v38 }
 0x2b4   :  { %1299 = vrcp.f32 %v1704_v40 }
 0x2b5   :  { %1301 = vrcp.f32 %v1706_v51 }
 0x2b6   :  { %v1284_v39 = vpop.eup %1283  ;;  %1303 = vrcp.f32 %v1710_v45 }
 0x2b7   :  { %v1286_v52 = vpop.eup %1285  ;;  %925 = vperm.xlu1 %1282, %v1284_v39   ;;  %1305 = vrcp.f32 %v1712_v47 }
 0x2b8   :  { %v1288_v44 = vpop.eup %1287  ;;  %915 = vperm.xlu0 %1281, %v1286_v52   ;;  %1307 = vrcp.f32 %v1716_v1 }
 0x2b9   :  { %v1290_v59 = vpop.eup %1289  ;;  %1309 = vrcp.f32 %v1718_v10 }
 0x2ba   :  { %v1292_v46 = vpop.eup %1291  ;;  %1311 = vrcp.f32 %v1722_v50 }
 0x2bb   :  { %930 = vperm.xlu1 %1282, %v1288_v44   ;;  %v1294_v5 = vpop.eup %1293  ;;  %1313 = vrcp.f32 %v1724_v14 }
 0x2bc   :  { %920 = vperm.xlu0 %1281, %v1290_v59   ;;  %v1296_v13 = vpop.eup %1295 }
 0x2bd   :  { %v1298_v48 = vpop.eup %1297 }
 0x2be   :  { %v1300_v12 = vpop.eup %1299 }
 0x2bf   :  { %940 = vperm.xlu1 %1282, %v1292_v46   ;;  %v1302_v22 = vpop.eup %1301 }
 0x2c0   :  { %935 = vperm.xlu0 %1281, %v1294_v5   ;;  %v1304_v20 = vpop.eup %1303 }
 0x2c1   :  { %v1306_v53 = vpop.eup %1305 }
 0x2c2   :  { %v1308_v24 = vpop.eup %1307 }
 0x2c3   :  { %950 = vperm.xlu1 %1282, %v1296_v13   ;;  %v1310_v30 = vpop.eup %1309 }
 0x2c4   :  { %945 = vperm.xlu0 %1281, %v1298_v48   ;;  %v1312_v28 = vpop.eup %1311 }
 0x2c5   :  { %v1314_v41 = vpop.eup %1313 }
 0x2c7   :  { %960 = vperm.xlu1 %1282, %v1300_v12  }
 0x2c8   :  { %955 = vperm.xlu0 %1281, %v1302_v22  }
 0x2cb   :  { %970 = vperm.xlu1 %1282, %v1304_v20  }
 0x2cc   :  { %965 = vperm.xlu0 %1281, %v1306_v53  }
 0x2cf   :  { %980 = vperm.xlu1 %1282, %v1308_v24  }
 0x2d0   :  { %975 = vperm.xlu0 %1281, %v1310_v30  }
 0x2d3   :  { %990 = vperm.xlu1 %1282, %v1312_v28  }
 0x2d4   :  { %985 = vperm.xlu0 %1281, %v1314_v41  }
 0x336   :  { %v926_v37 = vpop.permute.xlu1 %925 }
 0x337   :  { %v995_v60 = vmul.f32 %v926_v37, %v1680_v26  ;;  %v916_v42 = vpop.permute.xlu0 %915 }
 0x338   :  { %v993_v49 = vmul.f32 %v916_v42, %v1682_v27 }
 0x339   :  { %v1014_v62 = vsel %vm1011_vm1, 0.0, %v995_v60 }
 0x33a   :  { %v1037_v43 = vadd.f32 %v1734_v58, %v1014_v62  ;;  %v1012_v54 = vsel %vm1011_vm1, 0.0, %v993_v49  ;;  %v931_v0 = vpop.permute.xlu1 %930 }
 0x33b   :  { %v1035_v2 = vadd.f32 %v1734_v58, %v1012_v54  ;;  %v996_v57 = vmul.f32 %v931_v0, %v1684_v29  ;;  %v921_v19 = vpop.permute.xlu0 %920 }
 0x33c   :  { %v1053_v55 = vmax.f32 %v1037_v43, 0.0  ;;  %v994_v3 = vmul.f32 %v921_v19, %v1687_v33 }
 0x33d   :  { %v1051_v4 = vmax.f32 %v1035_v2, 0.0  ;;  %v1015_v6 = vsel %vm1011_vm1, 0.0, %v996_v57 }
 0x33e   :  { %1069 = vst [vmem:[%s1853_s7 + $0x10] sm:$0xff] %v1053_v55  ;;  %v1038_v61 = vadd.f32 %v1734_v58, %v1015_v6  ;;  %v1013_v11 = vsel %vm1011_vm1, 0.0, %v994_v3  ;;  %v941_v7 = vpop.permute.xlu1 %940 }
 0x33f   :  { %1067 = vst [vmem:[%s1853_s7] sm:$0xff] %v1051_v4  ;;  %v1036_v8 = vadd.f32 %v1734_v58, %v1013_v11  ;;  %v998_v15 = vmul.f32 %v941_v7, %v1692_v34  ;;  %v936_v9 = vpop.permute.xlu0 %935 }
 0x340   :  { %v1054_v16 = vmax.f32 %v1038_v61, 0.0  ;;  %v997_v17 = vmul.f32 %v936_v9, %v1694_v35 }
 0x341   :  { %v1052_v63 = vmax.f32 %v1036_v8, 0.0  ;;  %v1017_v18 = vsel %vm1011_vm1, 0.0, %v998_v15 }
 0x342   :  { %1070 = vst [vmem:[%s1853_s7 + $0x18] sm:$0xff] %v1054_v16  ;;  %v1040_v21 = vadd.f32 %v1734_v58, %v1017_v18  ;;  %v1016_v23 = vsel %vm1011_vm1, 0.0, %v997_v17  ;;  %v951_v25 = vpop.permute.xlu1 %950 }
 0x343   :  { %1068 = vst [vmem:[%s1853_s7 + $0x8] sm:$0xff] %v1052_v63  ;;  %v1039_v26 = vadd.f32 %v1734_v58, %v1016_v23  ;;  %v1000_v27 = vmul.f32 %v951_v25, %v1698_v36  ;;  %v946_v29 = vpop.permute.xlu0 %945 }
 0x344   :  { %v1056_v32 = vmax.f32 %v1040_v21, 0.0  ;;  %v999_v33 = vmul.f32 %v946_v29, %v1700_v38 }
 0x345   :  { %v1055_v34 = vmax.f32 %v1039_v26, 0.0  ;;  %v1019_v35 = vsel %vm1011_vm1, 0.0, %v1000_v27 }
 0x346   :  { %1072 = vst [vmem:[%s1853_s7 + $0x28] sm:$0xff] %v1056_v32  ;;  %v1042_v39 = vadd.f32 %v1734_v58, %v1019_v35  ;;  %v1018_v52 = vsel %vm1011_vm1, 0.0, %v999_v33  ;;  %v961_v44 = vpop.permute.xlu1 %960 }
 0x347   :  { %1071 = vst [vmem:[%s1853_s7 + $0x20] sm:$0xff] %v1055_v34  ;;  %v1041_v36 = vadd.f32 %v1734_v58, %v1018_v52  ;;  %v1002_v38 = vmul.f32 %v961_v44, %v1704_v40  ;;  %v956_v59 = vpop.permute.xlu0 %955 }
 0x348   :  { %v1058_v46 = vmax.f32 %v1042_v39, 0.0  ;;  %v1001_v5 = vmul.f32 %v956_v59, %v1706_v51 }
 0x349   :  { %v1057_v13 = vmax.f32 %v1041_v36, 0.0  ;;  %v1021_v48 = vsel %vm1011_vm1, 0.0, %v1002_v38 }
 0x34a   :  { %1074 = vst [vmem:[%s1853_s7 + $0x38] sm:$0xff] %v1058_v46  ;;  %v1044_v12 = vadd.f32 %v1734_v58, %v1021_v48  ;;  %v1020_v22 = vsel %vm1011_vm1, 0.0, %v1001_v5  ;;  %v971_v20 = vpop.permute.xlu1 %970 }
 0x34b   :  { %1073 = vst [vmem:[%s1853_s7 + $0x30] sm:$0xff] %v1057_v13  ;;  %v1043_v40 = vadd.f32 %v1734_v58, %v1020_v22  ;;  %v1004_v51 = vmul.f32 %v971_v20, %v1710_v45  ;;  %v966_v53 = vpop.permute.xlu0 %965 }
 0x34c   :  { %v1060_v24 = vmax.f32 %v1044_v12, 0.0  ;;  %v1003_v30 = vmul.f32 %v966_v53, %v1712_v47 }
 0x34d   :  { %v1059_v28 = vmax.f32 %v1043_v40, 0.0  ;;  %v1023_v41 = vsel %vm1011_vm1, 0.0, %v1004_v51 }
 0x34e   :  { %1076 = vst [vmem:[%s1853_s7 + $0x48] sm:$0xff] %v1060_v24  ;;  %v1046_v56 = vadd.f32 %v1734_v58, %v1023_v41  ;;  %v1022_v37 = vsel %vm1011_vm1, 0.0, %v1003_v30  ;;  %v981_v60 = vpop.permute.xlu1 %980 }
 0x34f   :  { %1075 = vst [vmem:[%s1853_s7 + $0x40] sm:$0xff] %v1059_v28  ;;  %v1045_v45 = vadd.f32 %v1734_v58, %v1022_v37  ;;  %v1006_v47 = vmul.f32 %v981_v60, %v1716_v1  ;;  %v976_v42 = vpop.permute.xlu0 %975 }
 0x350   :  { %v1062_v49 = vmax.f32 %v1046_v56, 0.0  ;;  %v1005_v62 = vmul.f32 %v976_v42, %v1718_v10 }
 0x351   :  { %v1061_v43 = vmax.f32 %v1045_v45, 0.0  ;;  %v1025_v54 = vsel %vm1011_vm1, 0.0, %v1006_v47 }
 0x352   :  { %1078 = vst [vmem:[%s1853_s7 + $0x58] sm:$0xff] %v1062_v49  ;;  %v1048_v0 = vadd.f32 %v1734_v58, %v1025_v54  ;;  %v1024_v2 = vsel %vm1011_vm1, 0.0, %v1005_v62  ;;  %v991_v57 = vpop.permute.xlu1 %990 }
 0x353   :  { %1077 = vst [vmem:[%s1853_s7 + $0x50] sm:$0xff] %v1061_v43  ;;  %v1047_v1 = vadd.f32 %v1734_v58, %v1024_v2  ;;  %v1008_v10 = vmul.f32 %v991_v57, %v1722_v50  ;;  %v986_v19 = vpop.permute.xlu0 %985 }
 0x354   :  { %v1064_v55 = vmax.f32 %v1048_v0, 0.0  ;;  %v1007_v3 = vmul.f32 %v986_v19, %v1724_v14 }
 0x355   :  { %v1063_v4 = vmax.f32 %v1047_v1, 0.0  ;;  %v1027_v6 = vsel %vm1011_vm1, 0.0, %v1008_v10 }
 0x356   :  { %1080 = vst [vmem:[%s1853_s7 + $0x68] sm:$0xff] %v1064_v55  ;;  %v1050_v61 = vadd.f32 %v1734_v58, %v1027_v6  ;;  %v1026_v11 = vsel %vm1011_vm1, 0.0, %v1007_v3 }
 0x357   :  { %1079 = vst [vmem:[%s1853_s7 + $0x60] sm:$0xff] %v1063_v4  ;;  %v1049_v50 = vadd.f32 %v1734_v58, %v1026_v11 }
 0x358   :  { %v1066_v14 = vmax.f32 %v1050_v61, 0.0 }
 0x359   :  { %v1065_v7 = vmax.f32 %v1049_v50, 0.0 }
 0x35a   :  { %1082 = vst [vmem:[%s1853_s7 + $0x78] sm:$0xff] %v1066_v14 }
 0x35b   :  { %1081 = vst [vmem:[%s1853_s7 + $0x70] sm:$0xff] %v1065_v7 }
 0x35c PF:  {}

// kernel: encoder_gat_forward.9
= control target key start
LH: loop header
LB: loop body
LE: loop exit
PB: predicated region body
PF: predicated region fallthrough
CT: control target
= control target key end

     0   :  { %vm323_vm1 = vcmask 15360   ;;  %s967_s1 = inlined_call_operand.vmem [shape: f32[128,128], index: 1, kind: input, shape index: {}]   ;;  %s968_s0 = inlined_call_operand.vmem [shape: f32[128,128], index: 0, kind: input, shape index: {}]   ;;  %s969_s2 = inlined_call_operand.vmem [shape: f32[128,2], index: 2, kind: input, shape index: {}]   ;;  %s970_s3 = inlined_call_operand.vmem [shape: bf16[128,128], index: 3, kind: output, shape index: {0}]   ;;  %s971_s4 = inlined_call_operand.vmem [shape: f32[128,2], index: 4, kind: output, shape index: {1}]  }
   0x1   :  { %v41_v0 = vld [vmem:[%s967_s1] sm:$0xff]  ;;  %v42_v1 = vld [vmem:[%s967_s1 + $0x8] sm:$0xff]  ;;  %v43_v2 = vld [vmem:[%s967_s1 + $0x10] sm:$0xff] }
   0x2   :  { %v57_v3 = vpack.c.bf16 %v42_v1, %v41_v0  ;;  %v44_v4 = vld [vmem:[%s967_s1 + $0x18] sm:$0xff]  ;;  %v45_v6 = vld [vmem:[%s967_s1 + $0x20] sm:$0xff]  ;;  %v46_v7 = vld [vmem:[%s967_s1 + $0x28] sm:$0xff] }
   0x3   :  { %v58_v5 = vpack.c.bf16 %v44_v4, %v43_v2  ;;  %v59_v8 = vpack.c.bf16 %v46_v7, %v45_v6  ;;  %v17_v9 = vld [vmem:[%s968_s0] sm:$0xff]  ;;  %v18_v10 = vld [vmem:[%s968_s0 + $0x8] sm:$0xff]  ;;  %v47_v11 = vld [vmem:[%s967_s1 + $0x30] sm:$0xff] }
   0x4   :  { %574 = vmatprep.subr.bf16.mxu0 %v57_v3  ;;  %v48_v12 = vld [vmem:[%s967_s1 + $0x38] sm:$0xff]  ;;  %v33_v13 = vpack.c.bf16 %v18_v10, %v17_v9  ;;  %v49_v15 = vld [vmem:[%s967_s1 + $0x40] sm:$0xff]  ;;  %v50_v16 = vld [vmem:[%s967_s1 + $0x48] sm:$0xff] }
   0x5   :  { %575 = vmatpush3.bf16.msra.mxu0 %v57_v3  ;;  %v60_v14 = vpack.c.bf16 %v48_v12, %v47_v11  ;;  %v162_v17 = vld [vmem:[%s969_s2] sm:$0xff]  ;;  %v163_v18 = vld [vmem:[%s969_s2 + $0x8] sm:$0xff]  ;;  %v164_v19 = vld [vmem:[%s969_s2 + $0x10] sm:$0xff]  ;;  %v61_v23 = vpack.c.bf16 %v50_v16, %v49_v15 }
   0x6   :  { %576 = vmatprep.subr.bf16.mxu0 %v58_v5  ;;  %590 = vmatprep.mubr.bf16.mxu0 %v33_v13  ;;  %v165_v20 = vld [vmem:[%s969_s2 + $0x18] sm:$0xff]  ;;  %v662_v21 = vpack.c.bf16 %v163_v18, %v162_v17  ;;  %v166_v24 = vld [vmem:[%s969_s2 + $0x20] sm:$0xff]  ;;  %v167_v25 = vld [vmem:[%s969_s2 + $0x28] sm:$0xff] }
   0x7   :  { %v666_v22 = vpack.c.bf16 %v165_v20, %v164_v19  ;;  %v51_v26 = vld [vmem:[%s967_s1 + $0x50] sm:$0xff]  ;;  %v52_v27 = vld [vmem:[%s967_s1 + $0x58] sm:$0xff]  ;;  %v670_v28 = vpack.c.bf16 %v167_v25, %v166_v24  ;;  %v53_v32 = vld [vmem:[%s967_s1 + $0x60] sm:$0xff] }
   0x8   :  { %663 = vmatprep.subr.bf16.mxu1 %v662_v21  ;;  %v62_v29 = vpack.c.bf16 %v52_v27, %v51_v26  ;;  %v168_v30 = vld [vmem:[%s969_s2 + $0x30] sm:$0xff]  ;;  %v169_v31 = vld [vmem:[%s969_s2 + $0x38] sm:$0xff]  ;;  %v54_v33 = vld [vmem:[%s967_s1 + $0x68] sm:$0xff] }
   0x9   :  { %577 = vmatpush3.bf16.msra.mxu0 %v58_v5  ;;  %665 = vmatpush3.bf16.msra.mxu1 %v662_v21  ;;  %v674_v34 = vpack.c.bf16 %v169_v31, %v168_v30  ;;  %v63_v35 = vpack.c.bf16 %v54_v33, %v53_v32  ;;  %v170_v36 = vld [vmem:[%s969_s2 + $0x40] sm:$0xff]  ;;  %v171_v37 = vld [vmem:[%s969_s2 + $0x48] sm:$0xff]  ;;  %v55_v38 = vld [vmem:[%s967_s1 + $0x70] sm:$0xff] }
   0xa   :  { %578 = vmatprep.subr.bf16.mxu0 %v59_v8  ;;  %667 = vmatprep.subr.bf16.mxu1 %v666_v22  ;;  %v56_v39 = vld [vmem:[%s967_s1 + $0x78] sm:$0xff]  ;;  %v678_v40 = vpack.c.bf16 %v171_v37, %v170_v36  ;;  %v172_v42 = vld [vmem:[%s969_s2 + $0x50] sm:$0xff]  ;;  %v21_v46 = vld [vmem:[%s968_s0 + $0x20] sm:$0xff] }
   0xb   :  { %v64_v41 = vpack.c.bf16 %v56_v39, %v55_v38  ;;  %v173_v43 = vld [vmem:[%s969_s2 + $0x58] sm:$0xff]  ;;  %v19_v44 = vld [vmem:[%s968_s0 + $0x10] sm:$0xff]  ;;  %v22_v48 = vld [vmem:[%s968_s0 + $0x28] sm:$0xff] }
   0xc   :  { %v20_v45 = vld [vmem:[%s968_s0 + $0x18] sm:$0xff]  ;;  %v682_v47 = vpack.c.bf16 %v173_v43, %v172_v42  ;;  %v174_v49 = vld [vmem:[%s969_s2 + $0x60] sm:$0xff]  ;;  %v175_v50 = vld [vmem:[%s969_s2 + $0x68] sm:$0xff]  ;;  %v35_v52 = vpack.c.bf16 %v22_v48, %v21_v46 }
   0xd   :  { %579 = vmatpush3.bf16.msra.mxu0 %v59_v8  ;;  %669 = vmatpush3.bf16.msra.mxu1 %v666_v22  ;;  %v34_v51 = vpack.c.bf16 %v20_v45, %v19_v44  ;;  %v686_v53 = vpack.c.bf16 %v175_v50, %v174_v49  ;;  %v23_v54 = vld [vmem:[%s968_s0 + $0x30] sm:$0xff]  ;;  %v24_v55 = vld [vmem:[%s968_s0 + $0x38] sm:$0xff]  ;;  %v25_v56 = vld [vmem:[%s968_s0 + $0x40] sm:$0xff]  ;;  %v340_v8 = vlaneseq }
   0xe   :  { %580 = vmatprep.subr.bf16.mxu0 %v60_v14  ;;  %671 = vmatprep.subr.bf16.mxu1 %v670_v28  ;;  %v26_v57 = vld [vmem:[%s968_s0 + $0x48] sm:$0xff]  ;;  %v36_v58 = vpack.c.bf16 %v24_v55, %v23_v54  ;;  %v27_v60 = vld [vmem:[%s968_s0 + $0x50] sm:$0xff]  ;;  %v28_v61 = vld [vmem:[%s968_s0 + $0x58] sm:$0xff] }
   0xf   :  { %v37_v59 = vpack.c.bf16 %v26_v57, %v25_v56  ;;  %v29_v62 = vld [vmem:[%s968_s0 + $0x60] sm:$0xff]  ;;  %v30_v63 = vld [vmem:[%s968_s0 + $0x68] sm:$0xff]  ;;  %v38_v0 = vpack.c.bf16 %v28_v61, %v27_v60  ;;  %v31_v2 = vld [vmem:[%s968_s0 + $0x70] sm:$0xff]  ;;  %v341_v9 = vand.u32 127, %v340_v8 }
  0x10   :  { %v39_v1 = vpack.c.bf16 %v30_v63, %v29_v62  ;;  %v32_v3 = vld [vmem:[%s968_s0 + $0x78] sm:$0xff]  ;;  %v176_v5 = vld [vmem:[%s969_s2 + $0x70] sm:$0xff] }
  0x11   :  { %581 = vmatpush3.bf16.msra.mxu0 %v60_v14  ;;  %673 = vmatpush3.bf16.msra.mxu1 %v670_v28  ;;  %v40_v4 = vpack.c.bf16 %v32_v3, %v31_v2  ;;  %v177_v6 = vld [vmem:[%s969_s2 + $0x78] sm:$0xff]  ;;  %vm342_vm0 = vcmp.eq.s32.totalorder %v341_v9, 32 }
  0x12   :  { %582 = vmatprep.subr.bf16.mxu0 %v61_v23  ;;  %675 = vmatprep.subr.bf16.mxu1 %v674_v34  ;;  %v690_v7 = vpack.c.bf16 %v177_v6, %v176_v5 }
  0x15   :  { %583 = vmatpush3.bf16.msra.mxu0 %v61_v23  ;;  %677 = vmatpush3.bf16.msra.mxu1 %v674_v34 }
  0x16   :  { %584 = vmatprep.subr.bf16.mxu0 %v62_v29  ;;  %679 = vmatprep.subr.bf16.mxu1 %v678_v40 }
  0x19   :  { %585 = vmatpush3.bf16.msra.mxu0 %v62_v29  ;;  %681 = vmatpush3.bf16.msra.mxu1 %v678_v40 }
  0x1a   :  { %586 = vmatprep.subr.bf16.mxu0 %v63_v35  ;;  %683 = vmatprep.subr.bf16.mxu1 %v682_v47 }
  0x1d   :  { %587 = vmatpush3.bf16.msra.mxu0 %v63_v35  ;;  %685 = vmatpush3.bf16.msra.mxu1 %v682_v47 }
  0x1e   :  { %588 = vmatprep.subr.bf16.mxu0 %v64_v41  ;;  %687 = vmatprep.subr.bf16.mxu1 %v686_v53 }
  0x21   :  { %589 = vmatpush3.bf16.msra.mxu0 %v64_v41  ;;  %689 = vmatpush3.bf16.msra.mxu1 %v686_v53 }
  0x22   :  { %691 = vmatprep.subr.bf16.mxu1 %v690_v7 }
  0x24   :  { %591 = vmatmul.mubr.bf16.vlgmr.msra.gmra.mrb[0].mxu0 %v34_v51 }
  0x25   :  { %594 = vmatprep.mubr.bf16.mxu0 %v35_v52  ;;  %693 = vmatpush3.bf16.msra.mxu1 %v690_v7 }
  0x2c   :  { %595 = vmatmul.mubr.bf16.gmra.mrb[4].mxu0 %v36_v58 }
  0x2d   :  { %598 = vmatprep.mubr.bf16.mxu0 %v37_v59 }
  0x34   :  { %599 = vmatmul.mubr.bf16.gmra.mrb[8].mxu0 %v38_v0 }
  0x35   :  { %602 = vmatprep.mubr.bf16.mxu0 %v39_v1 }
  0x3c   :  { %603 = vmatmul.mubr.bf16.gmra.mrb[12].mxu0 %v40_v4 }
  0xf7   :  { %v592_v10 = vpop.f32.mrb[0].mxu0 }
  0xf8   :  { %v99_v11 = vpop.f32.mrb[1].mxu0  ;;  %v345_v13 = vsel %vm342_vm0, 1.0, %v592_v10 }
  0xf9   :  { %v593_v12 = vpop.f32.mrb[2].mxu0  ;;  %638 = vmatprep.mubr.f32.mxu1 %v99_v11  ;;  %v343_v16 = vsel %vm342_vm0, 1.0, %v99_v11 }
  0xfa   :  { %v346_v14 = vsel %vm342_vm0, 1.0, %v593_v12  ;;  %v102_v15 = vpop.f32.mrb[3].mxu0 }
  0xfb   :  { %v487_v17 = vpack.c.bf16 %v346_v14, %v345_v13  ;;  %v344_v18 = vsel %vm342_vm0, 1.0, %v102_v15  ;;  %639 = vmatmul.mubr.f32.vlgmr.msra.gmra.mrb[0].mxu1 %v102_v15 }
  0xfc   :  { %v482_v19 = vpack.c.bf16 %v344_v18, %v343_v16  ;;  %641 = vmatprep.mubr.f32.mxu1 %v592_v10 }
  0xfd   :  { %519 = vst [vmem:[%s970_s3 + $0x8] sm:$0xff] %v487_v17  }
  0xfe   :  { %483 = vst [vmem:[%s970_s3] sm:$0xff] %v482_v19  }
  0xff   :  { %v596_v20 = vpop.f32.mrb[4].mxu0  ;;  %642 = vmatmul.mubr.f32.gmra.mrb[2].mxu1 %v593_v12 }
 0x100   :  { %v115_v21 = vpop.f32.mrb[5].mxu0  ;;  %v349_v23 = vsel %vm342_vm0, 1.0, %v596_v20 }
 0x101   :  { %v597_v22 = vpop.f32.mrb[6].mxu0  ;;  %644 = vmatprep.mubr.f32.mxu1 %v115_v21  ;;  %v347_v26 = vsel %vm342_vm0, 1.0, %v115_v21 }
 0x102   :  { %v350_v24 = vsel %vm342_vm0, 1.0, %v597_v22  ;;  %v118_v25 = vpop.f32.mrb[7].mxu0 }
 0x103   :  { %v497_v27 = vpack.c.bf16 %v350_v24, %v349_v23  ;;  %v348_v28 = vsel %vm342_vm0, 1.0, %v118_v25  ;;  %645 = vmatmul.mubr.f32.gmra.mrb[4].mxu1 %v118_v25 }
 0x104   :  { %v492_v29 = vpack.c.bf16 %v348_v28, %v347_v26  ;;  %647 = vmatprep.mubr.f32.mxu1 %v596_v20 }
 0x105   :  { %521 = vst [vmem:[%s970_s3 + $0x18] sm:$0xff] %v497_v27  }
 0x106   :  { %520 = vst [vmem:[%s970_s3 + $0x10] sm:$0xff] %v492_v29  }
 0x107   :  { %v600_v30 = vpop.f32.mrb[8].mxu0  ;;  %648 = vmatmul.mubr.f32.gmra.mrb[6].mxu1 %v597_v22 }
 0x108   :  { %v131_v31 = vpop.f32.mrb[9].mxu0  ;;  %v353_v33 = vsel %vm342_vm0, 1.0, %v600_v30 }
 0x109   :  { %v601_v32 = vpop.f32.mrb[10].mxu0  ;;  %650 = vmatprep.mubr.f32.mxu1 %v131_v31  ;;  %v351_v36 = vsel %vm342_vm0, 1.0, %v131_v31 }
 0x10a   :  { %v354_v34 = vsel %vm342_vm0, 1.0, %v601_v32  ;;  %v134_v35 = vpop.f32.mrb[11].mxu0 }
 0x10b   :  { %v507_v37 = vpack.c.bf16 %v354_v34, %v353_v33  ;;  %v352_v38 = vsel %vm342_vm0, 1.0, %v134_v35  ;;  %651 = vmatmul.mubr.f32.gmra.mrb[8].mxu1 %v134_v35 }
 0x10c   :  { %v502_v39 = vpack.c.bf16 %v352_v38, %v351_v36  ;;  %653 = vmatprep.mubr.f32.mxu1 %v600_v30 }
 0x10d   :  { %523 = vst [vmem:[%s970_s3 + $0x28] sm:$0xff] %v507_v37  }
 0x10e   :  { %522 = vst [vmem:[%s970_s3 + $0x20] sm:$0xff] %v502_v39  }
 0x10f   :  { %v604_v40 = vpop.f32.mrb[12].mxu0  ;;  %654 = vmatmul.mubr.f32.gmra.mrb[10].mxu1 %v601_v32 }
 0x110   :  { %v147_v41 = vpop.f32.mrb[13].mxu0  ;;  %v357_v43 = vsel %vm342_vm0, 1.0, %v604_v40 }
 0x111   :  { %v605_v42 = vpop.f32.mrb[14].mxu0  ;;  %656 = vmatprep.mubr.f32.mxu1 %v147_v41  ;;  %v355_v46 = vsel %vm342_vm0, 1.0, %v147_v41 }
 0x112   :  { %v358_v44 = vsel %vm342_vm0, 1.0, %v605_v42  ;;  %v150_v45 = vpop.f32.mrb[15].mxu0 }
 0x113   :  { %v517_v47 = vpack.c.bf16 %v358_v44, %v357_v43  ;;  %v356_v48 = vsel %vm342_vm0, 1.0, %v150_v45  ;;  %657 = vmatmul.mubr.f32.gmra.mrb[12].mxu1 %v150_v45 }
 0x114   :  { %v512_v49 = vpack.c.bf16 %v356_v48, %v355_v46  ;;  %659 = vmatprep.mubr.f32.mxu1 %v604_v40 }
 0x115   :  { %525 = vst [vmem:[%s970_s3 + $0x38] sm:$0xff] %v517_v47  }
 0x116   :  { %524 = vst [vmem:[%s970_s3 + $0x30] sm:$0xff] %v512_v49  }
 0x117   :  { %660 = vmatmul.mubr.f32.gmra.mrb[14].mxu1 %v605_v42 }
 0x1ce   :  { %v640_v50 = vpop.f32.mrb[0].mxu1 }
 0x1cf   :  { %325 = vst.msk [vmem:[%s971_s4 + $0x8] sm:$0xff] %vm323_vm1, %v640_v50  ;;  %v244_v51 = vpop.f32.mrb[1].mxu1 }
 0x1d0   :  { %324 = vst.msk [vmem:[%s971_s4] sm:$0xff] %vm323_vm1, %v244_v51 }
 0x1d2   :  { %v643_v52 = vpop.f32.mrb[2].mxu1 }
 0x1d3   :  { %327 = vst.msk [vmem:[%s971_s4 + $0x18] sm:$0xff] %vm323_vm1, %v643_v52  ;;  %v254_v53 = vpop.f32.mrb[3].mxu1 }
 0x1d4   :  { %326 = vst.msk [vmem:[%s971_s4 + $0x10] sm:$0xff] %vm323_vm1, %v254_v53 }
 0x1d6   :  { %v646_v54 = vpop.f32.mrb[4].mxu1 }
 0x1d7   :  { %329 = vst.msk [vmem:[%s971_s4 + $0x28] sm:$0xff] %vm323_vm1, %v646_v54  ;;  %v264_v55 = vpop.f32.mrb[5].mxu1 }
 0x1d8   :  { %328 = vst.msk [vmem:[%s971_s4 + $0x20] sm:$0xff] %vm323_vm1, %v264_v55 }
 0x1da   :  { %v649_v56 = vpop.f32.mrb[6].mxu1 }
 0x1db   :  { %331 = vst.msk [vmem:[%s971_s4 + $0x38] sm:$0xff] %vm323_vm1, %v649_v56  ;;  %v274_v57 = vpop.f32.mrb[7].mxu1 }
 0x1dc   :  { %330 = vst.msk [vmem:[%s971_s4 + $0x30] sm:$0xff] %vm323_vm1, %v274_v57 }
 0x1de   :  { %v652_v58 = vpop.f32.mrb[8].mxu1 }
 0x1df   :  { %333 = vst.msk [vmem:[%s971_s4 + $0x48] sm:$0xff] %vm323_vm1, %v652_v58  ;;  %v284_v59 = vpop.f32.mrb[9].mxu1 }
 0x1e0   :  { %332 = vst.msk [vmem:[%s971_s4 + $0x40] sm:$0xff] %vm323_vm1, %v284_v59 }
 0x1e2   :  { %v655_v60 = vpop.f32.mrb[10].mxu1 }
 0x1e3   :  { %335 = vst.msk [vmem:[%s971_s4 + $0x58] sm:$0xff] %vm323_vm1, %v655_v60  ;;  %v294_v61 = vpop.f32.mrb[11].mxu1 }
 0x1e4   :  { %334 = vst.msk [vmem:[%s971_s4 + $0x50] sm:$0xff] %vm323_vm1, %v294_v61 }
 0x1e6   :  { %v658_v62 = vpop.f32.mrb[12].mxu1 }
 0x1e7   :  { %337 = vst.msk [vmem:[%s971_s4 + $0x68] sm:$0xff] %vm323_vm1, %v658_v62  ;;  %v304_v63 = vpop.f32.mrb[13].mxu1 }
 0x1e8   :  { %336 = vst.msk [vmem:[%s971_s4 + $0x60] sm:$0xff] %vm323_vm1, %v304_v63 }
 0x1ea   :  { %v661_v0 = vpop.f32.mrb[14].mxu1 }
 0x1eb   :  { %339 = vst.msk [vmem:[%s971_s4 + $0x78] sm:$0xff] %vm323_vm1, %v661_v0  ;;  %v314_v1 = vpop.f32.mrb[15].mxu1 }
 0x1ec   :  { %338 = vst.msk [vmem:[%s971_s4 + $0x70] sm:$0xff] %vm323_vm1, %v314_v1 }

// kernel: encoder_gat_forward.13
= control target key start
LH: loop header
LB: loop body
LE: loop exit
PB: predicated region body
PF: predicated region fallthrough
CT: control target
= control target key end

     0   :  { %vm15_vm0 = vcmask 785408   ;;  %v191_v0 = vmov 0.0|0.0   ;;  %v192_v4 = vmov 0.0   ;;  %vm193_vm1 = vmmov 0   ;;  %s271_s1 = inlined_call_operand.vmem [shape: f32[128,96], index: 1, kind: input, shape index: {}]   ;;  %s272_s2 = inlined_call_operand.vmem [shape: f32[8,96], index: 2, kind: output, shape index: {}]   ;;  %s273_s0 = inlined_call_operand.vmem [shape: f32[8,128], index: 0, kind: input, shape index: {}]  }
   0x1   :  { %164 = vmatprep.subr.bf16.mxu0 %v191_v0  ;;  %v19_v1 = vld [vmem:[%s271_s1] sm:$0xff]  ;;  %v20_v2 = vld [vmem:[%s271_s1 + $0x8] sm:$0xff]  ;;  %v21_v3 = vld [vmem:[%s271_s1 + $0x10] sm:$0xff]  ;;  %16 = vst.msk [vmem:[%s272_s2] sm:$0xff] %vm15_vm0, %v192_v4  ;;  %161 = vmatprep.mubr.msk.f32.mxu0 %vm193_vm1, %v192_v4 }
   0x2   :  { %v165_v5 = vpack.c.bf16 %v20_v2, %v19_v1  ;;  %v22_v6 = vld [vmem:[%s271_s1 + $0x18] sm:$0xff]  ;;  %v23_v8 = vld [vmem:[%s271_s1 + $0x20] sm:$0xff]  ;;  %v24_v9 = vld [vmem:[%s271_s1 + $0x28] sm:$0xff] }
   0x3   :  { %v168_v7 = vpack.c.bf16 %v22_v6, %v21_v3  ;;  %v171_v10 = vpack.c.bf16 %v24_v9, %v23_v8  ;;  %v25_v11 = vld [vmem:[%s271_s1 + $0x30] sm:$0xff]  ;;  %v26_v12 = vld [vmem:[%s271_s1 + $0x38] sm:$0xff]  ;;  %v27_v14 = vld [vmem:[%s271_s1 + $0x40] sm:$0xff] }
   0x4   :  { %166 = vmatpush3.bf16.msra.mxu0 %v165_v5  ;;  %v174_v13 = vpack.c.bf16 %v26_v12, %v25_v11  ;;  %v28_v15 = vld [vmem:[%s271_s1 + $0x48] sm:$0xff]  ;;  %v29_v17 = vld [vmem:[%s271_s1 + $0x50] sm:$0xff]  ;;  %v30_v18 = vld [vmem:[%s271_s1 + $0x58] sm:$0xff] }
   0x5   :  { %167 = vmatprep.subr.bf16.mxu0 %v191_v0  ;;  %v177_v16 = vpack.c.bf16 %v28_v15, %v27_v14  ;;  %v180_v19 = vpack.c.bf16 %v30_v18, %v29_v17  ;;  %v31_v20 = vld [vmem:[%s271_s1 + $0x60] sm:$0xff]  ;;  %v32_v21 = vld [vmem:[%s271_s1 + $0x68] sm:$0xff]  ;;  %v33_v23 = vld [vmem:[%s271_s1 + $0x70] sm:$0xff] }
   0x6   :  { %v183_v22 = vpack.c.bf16 %v32_v21, %v31_v20  ;;  %v34_v24 = vld [vmem:[%s271_s1 + $0x78] sm:$0xff]  ;;  %v18_v26 = vld [vmem:[%s273_s0] sm:$0xff] }
   0x7   :  { %v186_v25 = vpack.c.bf16 %v34_v24, %v33_v23 }
   0x8   :  { %169 = vmatpush3.bf16.msra.mxu0 %v168_v7  ;;  %v17_v27 = vld [vmem:[%s272_s2] sm:$0xff] }
   0x9   :  { %170 = vmatprep.subr.bf16.mxu0 %v191_v0 }
   0xc   :  { %172 = vmatpush3.bf16.msra.mxu0 %v171_v10 }
   0xd   :  { %173 = vmatprep.subr.bf16.mxu0 %v191_v0 }
  0x10   :  { %175 = vmatpush3.bf16.msra.mxu0 %v174_v13 }
  0x11   :  { %176 = vmatprep.subr.bf16.mxu0 %v191_v0 }
  0x14   :  { %178 = vmatpush3.bf16.msra.mxu0 %v177_v16 }
  0x15   :  { %179 = vmatprep.subr.bf16.mxu0 %v191_v0 }
  0x18   :  { %181 = vmatpush3.bf16.msra.mxu0 %v180_v19 }
  0x19   :  { %182 = vmatprep.subr.bf16.mxu0 %v191_v0 }
  0x1c   :  { %184 = vmatpush3.bf16.msra.mxu0 %v183_v22 }
  0x1d   :  { %185 = vmatprep.subr.bf16.mxu0 %v191_v0 }
  0x20   :  { %187 = vmatpush3.bf16.msra.mxu0 %v186_v25 }
  0x23   :  { %162 = vmatmul.mubr.f32.vlgmr.msra.gmra.mrb[0].mxu0 %v18_v26 }
  0xf6   :  { %v101_v28 = vpop.f32.mrb[0].mxu0 }
  0xf7   :  { %v105_v29 = vadd.f32 %v101_v28, %v17_v27  ;;  %v163_v30 = vpop.f32.mrb[1].mxu0 }
  0xf9   :  { %107 = vst.msk [vmem:[%s272_s2] sm:$0xff] %vm15_vm0, %v105_v29 }

</bundles_post_ra>
